<compile_context>
chip_gen: v5e
topology: v5e:2x2
jax: 0.10.0
libtpu: 0.0.40
codegen_flags: <defaults>
</compile_context>

<pallas_src>
import functools

import jax
import jax.numpy as jnp
from jax import lax
from jax.experimental import pallas as pl
from jax.experimental.pallas import tpu as pltpu


# ---------------------------------------------------------------------------
# Kernels
# ---------------------------------------------------------------------------

def _mish_f32(z):
    # x * tanh(softplus(x)); tanh(softplus(z)) == 1 - 2 / ((1 + e^z)^2 + 1).
    # Exact divide (not approx reciprocal) to stay inside the test tolerance.
    t = 1.0 + jnp.exp(z)
    return z * (1.0 - 2.0 / (t * t + 1.0))


def _conv_bn_mish_fused_kernel(p_ref, w_ref, b_ref, o_ref):
    """Small-K fast path: one full-K block, no accumulator scratch."""
    z = jnp.dot(p_ref[...], w_ref[...], preferred_element_type=jnp.float32)
    z = z + b_ref[...]
    o_ref[...] = _mish_f32(z).astype(o_ref.dtype)


def _conv_bn_mish_reduce_kernel(p_ref, w_ref, b_ref, o_ref, acc_ref):
    """Large-K path: K tiled along grid axis 2, f32 VMEM accumulator."""
    kk = pl.program_id(2)
    prod = jnp.dot(p_ref[...], w_ref[...], preferred_element_type=jnp.float32)

    @pl.when(kk == 0)
    def _first():            # assign-on-first-step: no zero-init round trip
        acc_ref[...] = prod

    @pl.when(kk > 0)
    def _accumulate():
        acc_ref[...] += prod

    @pl.when(kk == pl.num_programs(2) - 1)
    def _finalize():
        z = acc_ref[...] + b_ref[...]
        o_ref[...] = _mish_f32(z).astype(o_ref.dtype)


# ---------------------------------------------------------------------------
# Wrapper helpers
# ---------------------------------------------------------------------------

def _round_up(x, m):
    return ((x + m - 1) // m) * m


def _pick_tile(dim, max_tile, mult):
    """Choose (tile, padded_dim): tile is a multiple of `mult`, padded_dim a
    multiple of tile, preferring the largest tile with little extra padding."""
    padded_min = _round_up(dim, mult)
    if padded_min <= max_tile:
        return padded_min, padded_min
    best = None
    t = (max_tile // mult) * mult
    while t >= mult:
        p = _round_up(dim, t)
        if best is None or p < best[1]:
            best = (t, p)
        if p - padded_min <= max(mult, padded_min // 8):
            return t, p
        t -= mult
    return best


def _im2col(x, k, stride):
    """NCHW -> (N*Ho*Wo, Cin*k*k); feature order matches OIHW weight reshape."""
    N, C, H, W = x.shape
    pad = k // 2
    xp = jnp.pad(x, ((0, 0), (0, 0), (pad, pad), (pad, pad)))
    Ho = (H + 2 * pad - k) // stride + 1
    Wo = (W + 2 * pad - k) // stride + 1
    cols = []
    for i in range(k):
        for j in range(k):
            cols.append(xp[:, :, i:i + stride * Ho:stride, j:j + stride * Wo:stride])
    cols = jnp.stack(cols, axis=2)                 # (N, C, k*k, Ho, Wo)
    cols = cols.reshape(N, C * k * k, Ho, Wo)      # feature idx = c*k*k + i*k + j
    cols = cols.transpose(0, 2, 3, 1).reshape(N * Ho * Wo, C * k * k)
    return cols, Ho, Wo


# ---------------------------------------------------------------------------
# BasicConv forward
# ---------------------------------------------------------------------------

def basic_conv(x, weight, gamma, beta, running_mean, running_var, *,
               stride=1, eps=1e-5, tm=512, tn=256, tk=512,
               max_fused_k=1024, matmul_dtype=None):
    """Forward of BasicConv: Conv2d(bias=False, pad=k//2) + BN(eval) + Mish."""
    N, C_in, H, W = x.shape
    C_out, C_in_w, kh, kw = weight.shape
    assert kh == kw and C_in_w == C_in
    k = kh

    # im2col (wrapper-side layout plumbing on the contiguous NCHW input).
    patches, Ho, Wo = _im2col(x, k, stride)        # (M, K)
    M, K = patches.shape

    # Fold BN running stats into per-channel scale/bias; fold scale into weights.
    f32 = jnp.float32
    inv_std = lax.rsqrt(running_var.astype(f32) + eps)
    scale = gamma.astype(f32) * inv_std                                  # (C_out,)
    bias = beta.astype(f32) - running_mean.astype(f32) * scale           # (C_out,)

    mm_dtype = jnp.dtype(x.dtype if matmul_dtype is None else matmul_dtype)
    wmat = (weight.astype(f32).reshape(C_out, C_in * k * k).T
            * scale[None, :]).astype(mm_dtype)                           # (K, C_out)
    patches = patches.astype(mm_dtype)

    # Tile selection. (On v7x, keep tm small enough that the i axis has >= 2
    # blocks for real-sized layers so the grid can split across both cores.)
    tm_eff, Mp = _pick_tile(M, tm, 8)
    tn_eff, Cp = _pick_tile(C_out, tn, 128)
    fuse_k = K <= max_fused_k
    if fuse_k:
        tk_eff = Kp = _round_up(K, 32)     # single full-K block (no 128 padding)
    else:
        tk_eff, Kp = _pick_tile(K, tk, 128)

    # Zero-pad operands (exact for the matmul; padded rows/cols sliced off).
    patches_p = jnp.pad(patches, ((0, Mp - M), (0, Kp - K)))
    wmat_p = jnp.pad(wmat, ((0, Kp - K), (0, Cp - C_out)))
    bias_p = jnp.pad(bias.reshape(1, C_out), ((0, 0), (0, Cp - C_out)))

    # Explicit VMEM budget: double-buffered operands + output + f32 accumulator.
    isz = mm_dtype.itemsize
    osz = jnp.dtype(x.dtype).itemsize
    step_bytes = (2 * (tm_eff * tk_eff * isz + tk_eff * tn_eff * isz
                       + tm_eff * tn_eff * osz + tn_eff * 4)
                  + tm_eff * tn_eff * 4)
    vmem_limit = int(min(48 * 1024 * 1024, max(32 * 1024 * 1024, 2 * step_bytes)))

    cost = pl.CostEstimate(
        flops=int(2 * Mp * Kp * Cp),
        transcendentals=int(2 * Mp * Cp),          # one exp + one divide / element
        bytes_accessed=int(patches_p.size * isz * (Cp // tn_eff)
                           + wmat_p.size * isz * (Mp // tm_eff)
                           + Mp * Cp * osz + bias_p.size * 4),
    )

    if fuse_k:
        out_p = pl.pallas_call(
            _conv_bn_mish_fused_kernel,
            out_shape=jax.ShapeDtypeStruct((Mp, Cp), x.dtype),
            grid_spec=pltpu.PrefetchScalarGridSpec(
                num_scalar_prefetch=0,
                grid=(Mp // tm_eff, Cp // tn_eff),
                in_specs=[
                    pl.BlockSpec((tm_eff, Kp), lambda i, j: (i, 0)),   # patches
                    pl.BlockSpec((Kp, tn_eff), lambda i, j: (0, j)),   # scaled W
                    pl.BlockSpec((1, tn_eff), lambda i, j: (0, j)),    # bn bias
                ],
                out_specs=pl.BlockSpec((tm_eff, tn_eff), lambda i, j: (i, j)),
            ),
            compiler_params=pltpu.CompilerParams(
                dimension_semantics=("parallel", "parallel"),
                vmem_limit_bytes=vmem_limit,
            ),
            cost_estimate=cost,
        )(patches_p, wmat_p, bias_p)
    else:
        out_p = pl.pallas_call(
            _conv_bn_mish_reduce_kernel,
            out_shape=jax.ShapeDtypeStruct((Mp, Cp), x.dtype),
            grid_spec=pltpu.PrefetchScalarGridSpec(
                num_scalar_prefetch=0,
                grid=(Mp // tm_eff, Cp // tn_eff, Kp // tk_eff),
                in_specs=[
                    pl.BlockSpec((tm_eff, tk_eff), lambda i, j, kk: (i, kk)),
                    pl.BlockSpec((tk_eff, tn_eff), lambda i, j, kk: (kk, j)),
                    pl.BlockSpec((1, tn_eff), lambda i, j, kk: (0, j)),
                ],
                out_specs=pl.BlockSpec((tm_eff, tn_eff), lambda i, j, kk: (i, j)),
                scratch_shapes=[pltpu.VMEM((tm_eff, tn_eff), jnp.float32)],
            ),
            compiler_params=pltpu.CompilerParams(
                dimension_semantics=("parallel", "parallel", "arbitrary"),
                vmem_limit_bytes=vmem_limit,
            ),
            cost_estimate=cost,
        )(patches_p, wmat_p, bias_p)

    out = out_p[:M, :C_out]                                       # (N*Ho*Wo, C_out)
    return out.reshape(N, Ho, Wo, C_out).transpose(0, 3, 1, 2)    # NCHW


# ---------------------------------------------------------------------------
# Test
# ---------------------------------------------------------------------------

def _ref_basic_conv(x, weight, gamma, beta, mean, var, stride, eps=1e-5):
    pad = weight.shape[-1] // 2
    conv = lax.conv_general_dilated(
        x, weight, window_strides=(stride, stride),
        padding=((pad, pad), (pad, pad)),
        dimension_numbers=("NCHW", "OIHW", "NCHW"),
        precision=lax.Precision.HIGHEST)
    inv_std = lax.rsqrt(var + eps)
    s = (gamma * inv_std).reshape(1, -1, 1, 1)
    b = (beta - mean * gamma * inv_std).reshape(1, -1, 1, 1)
    z = conv * s + b
    return z * jnp.tanh(jax.nn.softplus(z))


def _make_params(keys, c_in, c_out, ksize):
    weight = jax.random.normal(keys[0], (c_out, c_in, ksize, ksize), jnp.float32) * 0.1
    gamma = jax.random.uniform(keys[1], (c_out,), minval=0.5, maxval=1.5)
    beta = jax.random.normal(keys[2], (c_out,), jnp.float32) * 0.1
    mean = jax.random.normal(keys[3], (c_out,), jnp.float32) * 0.1
    var = jax.random.uniform(keys[4], (c_out,), minval=0.5, maxval=1.5)
    return weight, gamma, beta, mean, var


if __name__ == "__main__":
    key = jax.random.PRNGKey(0)
    ks = jax.random.split(key, 12)

    # --- test 1: fused small-K path (f32), BasicConv(4, 8, 3, stride=1) -------
    N, C_in, H, W = 2, 4, 16, 16
    C_out, ksize, stride = 8, 3, 1
    x1 = jax.random.normal(ks[0], (N, C_in, H, W), jnp.float32)
    w1, g1, b1, m1, v1 = _make_params(ks[1:6], C_in, C_out, ksize)

    out1 = jax.block_until_ready(basic_conv(x1, w1, g1, b1, m1, v1, stride=stride))
    ref1 = _ref_basic_conv(x1, w1, g1, b1, m1, v1, stride)
    assert out1.shape == (N, C_out, H, W), out1.shape
    # Tolerance accommodates MXU bf16-pass rounding of f32 operands.
    assert jnp.allclose(out1, ref1, atol=5e-3, rtol=5e-3), \
        float(jnp.max(jnp.abs(out1 - ref1)))

    # --- test 2: K-reduction path (forced), BasicConv(16, 8, 3, stride=2) -----
    N2, C_in2, H2, W2 = 2, 16, 8, 8
    C_out2, stride2 = 8, 2
    x2 = jax.random.normal(ks[6], (N2, C_in2, H2, W2), jnp.float32)
    w2, g2, b2, m2, v2 = _make_params(ks[7:12], C_in2, C_out2, ksize)

    out2 = jax.block_until_ready(
        basic_conv(x2, w2, g2, b2, m2, v2, stride=stride2, max_fused_k=0, tk=128))
    ref2 = _ref_basic_conv(x2, w2, g2, b2, m2, v2, stride2)
    assert out2.shape == (N2, C_out2, H2 // 2, W2 // 2), out2.shape
    assert jnp.allclose(out2, ref2, atol=5e-3, rtol=5e-3), \
        float(jnp.max(jnp.abs(out2 - ref2)))

    # --- test 3: bf16 matmul operands (f32 accumulation), looser tolerance ----
    out3 = jax.block_until_ready(
        basic_conv(x1, w1, g1, b1, m1, v1, stride=stride,
                   matmul_dtype=jnp.bfloat16))
    assert out3.shape == (N, C_out, H, W), out3.shape
    assert jnp.allclose(out3, ref1, atol=2e-2, rtol=2e-2), \
        float(jnp.max(jnp.abs(out3 - ref1)))

    print("KERNEL_OK")
</pallas_src>

<mosaic_0001>
module attributes {stable_mosaic.version = 11 : i64} {
  func.func @_conv_bn_mish_fused_kernel(%arg0: i32, %arg1: i32, %arg2: memref<512x64xf32, #tpu.memory_space<vmem>>, %arg3: memref<64x128xf32, #tpu.memory_space<vmem>>, %arg4: memref<1x128xf32, #tpu.memory_space<vmem>>, %arg5: memref<512x128xf32, #tpu.memory_space<vmem>>) attributes {dimension_semantics = [#tpu.dimension_semantics<parallel>, #tpu.dimension_semantics<parallel>], iteration_bounds = array<i64: 1, 1>, scalar_prefetch = 0 : i64, scratch_operands = 0 : i64, tpu.core_type = #tpu.core_type<tc>, window_params = [{transform_indices = @transform_0, window_bounds = array<i64: 512, 64>}, {transform_indices = @transform_1, window_bounds = array<i64: 64, 128>}, {transform_indices = @transform_2, window_bounds = array<i64: 1, 128>}, {transform_indices = @transform_3, window_bounds = array<i64: 512, 128>}]} {
    %c0 = arith.constant 0 : index
    %c0_0 = arith.constant 0 : index
    %0 = vector.load %arg2[%c0, %c0_0] : memref<512x64xf32, #tpu.memory_space<vmem>>, vector<512x64xf32>
    %c0_1 = arith.constant 0 : index
    %c0_2 = arith.constant 0 : index
    %1 = vector.load %arg3[%c0_1, %c0_2] : memref<64x128xf32, #tpu.memory_space<vmem>>, vector<64x128xf32>
    %cst = arith.constant dense<0.000000e+00> : vector<512x128xf32>
    %2 = tpu.matmul %0, %1, %cst {dimension_numbers = #tpu.dot_dimension_numbers<[1], [0], [0], [1], [0, 0, 1, 1], [], []>} : vector<512x64xf32>, vector<64x128xf32>, vector<512x128xf32> -> vector<512x128xf32>
    %c0_3 = arith.constant 0 : index
    %c0_4 = arith.constant 0 : index
    %3 = vector.load %arg4[%c0_3, %c0_4] : memref<1x128xf32, #tpu.memory_space<vmem>>, vector<1x128xf32>
    %4 = vector.broadcast %3 : vector<1x128xf32> to vector<512x128xf32>
    %5 = arith.addf %2, %4 : vector<512x128xf32>
    %6 = math.exp %5 : vector<512x128xf32>
    %cst_5 = arith.constant 1.000000e+00 : f32
    %7 = vector.broadcast %cst_5 : f32 to vector<512x128xf32>
    %8 = arith.addf %7, %6 : vector<512x128xf32>
    %9 = arith.mulf %8, %8 : vector<512x128xf32>
    %cst_6 = arith.constant 1.000000e+00 : f32
    %10 = vector.broadcast %cst_6 : f32 to vector<512x128xf32>
    %11 = arith.addf %9, %10 : vector<512x128xf32>
    %cst_7 = arith.constant 2.000000e+00 : f32
    %12 = vector.broadcast %cst_7 : f32 to vector<512x128xf32>
    %13 = arith.divf %12, %11 : vector<512x128xf32>
    %cst_8 = arith.constant 1.000000e+00 : f32
    %14 = vector.broadcast %cst_8 : f32 to vector<512x128xf32>
    %15 = arith.subf %14, %13 : vector<512x128xf32>
    %16 = arith.mulf %5, %15 : vector<512x128xf32>
    %c0_9 = arith.constant 0 : index
    %c0_10 = arith.constant 0 : index
    %17 = vector.load %arg5[%c0_9, %c0_10] : memref<512x128xf32, #tpu.memory_space<vmem>>, vector<512x128xf32>
    tpu.vector_store %arg5[%c0_9, %c0_10], %16 {strides = array<i32>} : memref<512x128xf32, #tpu.memory_space<vmem>>, vector<512x128xf32>,
    return
  }
  func.func @transform_0(%arg0: i32, %arg1: i32) -> (i32, i32) {
    %c0_i32 = arith.constant 0 : i32
    %c0_i32_0 = arith.constant 0 : i32
    return %arg0, %c0_i32 : i32, i32
  }
  func.func @transform_1(%arg0: i32, %arg1: i32) -> (i32, i32) {
    %c0_i32 = arith.constant 0 : i32
    %c0_i32_0 = arith.constant 0 : i32
    return %c0_i32, %arg1 : i32, i32
  }
  func.func @transform_2(%arg0: i32, %arg1: i32) -> (i32, i32) {
    %c0_i32 = arith.constant 0 : i32
    %c0_i32_0 = arith.constant 0 : i32
    return %c0_i32, %arg1 : i32, i32
  }
  func.func @transform_3(%arg0: i32, %arg1: i32) -> (i32, i32) {
    %c0_i32 = arith.constant 0 : i32
    return %arg0, %arg1 : i32, i32
  }
}

</mosaic_0001>

<bundles_post_ra>
// kernel: tpu_custom_call.1
= control target key start
LH: loop header
LB: loop body
LE: loop exit
PB: predicated region body
PF: predicated region fallthrough
CT: control target
= control target key end

     0   :  { %s3884_s0 = inlined_call_operand.vmem [shape: f32[512,64], index: 0, kind: input, shape index: {}]   ;;  %s3885_s1 = inlined_call_operand.vmem [shape: f32[64,128], index: 1, kind: input, shape index: {}]   ;;  %s3886_s2 = inlined_call_operand.vmem [shape: f32[1,128], index: 2, kind: input, shape index: {}]   ;;  %s3887_s3 = inlined_call_operand.hbm [shape: f32[512,128], index: 3, kind: output, shape index: {}]  }
   0x1   :  { %v86_v0 = vld [vmem:[%s3885_s1 + $0x38] sm:$0xff]  ;;  %v85_v1 = vld [vmem:[%s3885_s1 + $0x30] sm:$0xff]  ;;  %v84_v2 = vld [vmem:[%s3885_s1 + $0x28] sm:$0xff] }
   0x2   :  { %292 = vmatpush.msra.mxu0 %v86_v0  ;;  %2047 = vmatpush.msra.mxu1 %v86_v0  ;;  %v83_v3 = vld [vmem:[%s3885_s1 + $0x20] sm:$0xff]  ;;  %v82_v4 = vld [vmem:[%s3885_s1 + $0x18] sm:$0xff] }
   0x3   :  { %2048 = vmatpush.msra.mxu2 %v86_v0  ;;  %2049 = vmatpush.msra.mxu3 %v86_v0 }
   0x4   :  { %293 = vmatpush.msra.mxu0 %v85_v1  ;;  %2050 = vmatpush.msra.mxu1 %v85_v1 }
   0x5   :  { %2051 = vmatpush.msra.mxu2 %v85_v1  ;;  %2052 = vmatpush.msra.mxu3 %v85_v1 }
   0x6   :  { %294 = vmatpush.msra.mxu0 %v84_v2  ;;  %2053 = vmatpush.msra.mxu1 %v84_v2 }
   0x7   :  { %2054 = vmatpush.msra.mxu2 %v84_v2  ;;  %2055 = vmatpush.msra.mxu3 %v84_v2 }
   0x8   :  { %295 = vmatpush.msra.mxu0 %v83_v3  ;;  %2056 = vmatpush.msra.mxu1 %v83_v3 }
   0x9   :  { %8 = vsyncpa [#allocation3], 0  ;;  %2057 = vmatpush.msra.mxu2 %v83_v3  ;;  %2058 = vmatpush.msra.mxu3 %v83_v3  ;;  %v81_v5 = vld [vmem:[%s3885_s1 + $0x10] sm:$0xff]  ;;  %v80_v6 = vld [vmem:[%s3885_s1 + $0x8] sm:$0xff]  ;;  %vm91_vm0 = vcmask 523264   ;;  %s1971_s24 = sshll.u32 %s3887_s3, 4  ;;  %s1972_s24 = int_to_ptr.hbm [resolvable:$true] %s1971_s24 }
   0xa   :  { %296 = vmatpush.msra.mxu0 %v82_v4  ;;  %2059 = vmatpush.msra.mxu1 %v82_v4  ;;  %v79_v7 = vld [vmem:[%s3885_s1] sm:$0xff]  ;;  %v16_v12 = vld [vmem:[%s3884_s0 + $0x8] sm:$0xff]  ;;  %v17_v16 = vld [vmem:[%s3884_s0 + $0x10] sm:$0xff]  ;;  %s2360_s25 = smov 128   ;;  %s2361_s26 = smov 8  }
   0xb   :  { %2060 = vmatpush.msra.mxu2 %v82_v4  ;;  %2061 = vmatpush.msra.mxu3 %v82_v4  ;;  %v15_v8 = vld [vmem:[%s3884_s0] sm:$0xff]  ;;  %v32_v13 = vld [vmem:[%s3884_s0 + $0x88] sm:$0xff]  ;;  %v33_v17 = vld [vmem:[%s3884_s0 + $0x90] sm:$0xff] }
   0xc   :  { %297 = vmatpush.msra.mxu0 %v81_v5  ;;  %2062 = vmatpush.msra.mxu1 %v81_v5  ;;  %v31_v9 = vld [vmem:[%s3884_s0 + $0x80] sm:$0xff]  ;;  %v48_v14 = vld [vmem:[%s3884_s0 + $0x108] sm:$0xff]  ;;  %v49_v18 = vld [vmem:[%s3884_s0 + $0x110] sm:$0xff] }
   0xd   :  { %2063 = vmatpush.msra.mxu2 %v81_v5  ;;  %2064 = vmatpush.msra.mxu3 %v81_v5  ;;  %v47_v10 = vld [vmem:[%s3884_s0 + $0x100] sm:$0xff]  ;;  %v64_v15 = vld [vmem:[%s3884_s0 + $0x188] sm:$0xff]  ;;  %v65_v19 = vld [vmem:[%s3884_s0 + $0x190] sm:$0xff] }
   0xe   :  { %298 = vmatpush.msra.mxu0 %v80_v6  ;;  %2065 = vmatpush.msra.mxu1 %v80_v6  ;;  %v63_v11 = vld [vmem:[%s3884_s0 + $0x180] sm:$0xff]  ;;  %v18_v20 = vld [vmem:[%s3884_s0 + $0x18] sm:$0xff]  ;;  %v20_v28 = vld [vmem:[%s3884_s0 + $0x28] sm:$0xff] }
   0xf   :  { %2066 = vmatpush.msra.mxu2 %v80_v6  ;;  %2067 = vmatpush.msra.mxu3 %v80_v6  ;;  %v34_v21 = vld [vmem:[%s3884_s0 + $0x98] sm:$0xff]  ;;  %v19_v24 = vld [vmem:[%s3884_s0 + $0x20] sm:$0xff]  ;;  %v36_v29 = vld [vmem:[%s3884_s0 + $0xa8] sm:$0xff] }
  0x10   :  { %299 = vmatpush.msra.mxu0 %v79_v7  ;;  %2068 = vmatpush.msra.mxu1 %v79_v7  ;;  %v50_v22 = vld [vmem:[%s3884_s0 + $0x118] sm:$0xff]  ;;  %v35_v25 = vld [vmem:[%s3884_s0 + $0xa0] sm:$0xff]  ;;  %v52_v30 = vld [vmem:[%s3884_s0 + $0x128] sm:$0xff] }
  0x11   :  { %2069 = vmatpush.msra.mxu2 %v79_v7  ;;  %2070 = vmatpush.msra.mxu3 %v79_v7  ;;  %v66_v23 = vld [vmem:[%s3884_s0 + $0x198] sm:$0xff]  ;;  %v51_v26 = vld [vmem:[%s3884_s0 + $0x120] sm:$0xff]  ;;  %v68_v31 = vld [vmem:[%s3884_s0 + $0x1a8] sm:$0xff] }
  0x12   :  { %1983 = vmatmul.msk.f32.vlgmr.msra.gmra.mxu0 %vm91_vm0, %v15_v8  ;;  %1999 = vmatmul.msk.f32.vlgmr.msra.gmra.mxu1 %vm91_vm0, %v31_v9  ;;  %v67_v27 = vld [vmem:[%s3884_s0 + $0x1a0] sm:$0xff]  ;;  %v21_v32 = vld [vmem:[%s3884_s0 + $0x30] sm:$0xff]  ;;  %v22_v36 = vld [vmem:[%s3884_s0 + $0x38] sm:$0xff] }
  0x13   :  { %2015 = vmatmul.msk.f32.vlgmr.msra.gmra.mxu2 %vm91_vm0, %v47_v10  ;;  %2031 = vmatmul.msk.f32.vlgmr.msra.gmra.mxu3 %vm91_vm0, %v63_v11  ;;  %v37_v33 = vld [vmem:[%s3884_s0 + $0xb0] sm:$0xff]  ;;  %v38_v37 = vld [vmem:[%s3884_s0 + $0xb8] sm:$0xff]  ;;  %v23_v40 = vld [vmem:[%s3884_s0 + $0x40] sm:$0xff] }
  0x14   :  { %v53_v34 = vld [vmem:[%s3884_s0 + $0x130] sm:$0xff]  ;;  %v54_v38 = vld [vmem:[%s3884_s0 + $0x138] sm:$0xff]  ;;  %v39_v41 = vld [vmem:[%s3884_s0 + $0xc0] sm:$0xff] }
  0x15   :  { %v69_v35 = vld [vmem:[%s3884_s0 + $0x1b0] sm:$0xff]  ;;  %v70_v39 = vld [vmem:[%s3884_s0 + $0x1b8] sm:$0xff]  ;;  %v55_v42 = vld [vmem:[%s3884_s0 + $0x140] sm:$0xff] }
  0x16   :  { %v71_v43 = vld [vmem:[%s3884_s0 + $0x1c0] sm:$0xff]  ;;  %v24_v44 = vld [vmem:[%s3884_s0 + $0x48] sm:$0xff]  ;;  %v25_v48 = vld [vmem:[%s3884_s0 + $0x50] sm:$0xff] }
  0x17   :  { %v40_v45 = vld [vmem:[%s3884_s0 + $0xc8] sm:$0xff]  ;;  %v41_v49 = vld [vmem:[%s3884_s0 + $0xd0] sm:$0xff]  ;;  %v26_v52 = vld [vmem:[%s3884_s0 + $0x58] sm:$0xff] }
  0x18   :  { %v56_v46 = vld [vmem:[%s3884_s0 + $0x148] sm:$0xff]  ;;  %v57_v50 = vld [vmem:[%s3884_s0 + $0x150] sm:$0xff]  ;;  %v42_v53 = vld [vmem:[%s3884_s0 + $0xd8] sm:$0xff] }
  0x19   :  { %v72_v47 = vld [vmem:[%s3884_s0 + $0x1c8] sm:$0xff]  ;;  %v73_v51 = vld [vmem:[%s3884_s0 + $0x1d0] sm:$0xff]  ;;  %v58_v54 = vld [vmem:[%s3884_s0 + $0x158] sm:$0xff] }
  0x1a   :  { %1984 = vmatmul.msk.f32.gmra.mxu0 %vm91_vm0, %v16_v12  ;;  %2000 = vmatmul.msk.f32.gmra.mxu1 %vm91_vm0, %v32_v13  ;;  %v74_v55 = vld [vmem:[%s3884_s0 + $0x1d8] sm:$0xff]  ;;  %v27_v56 = vld [vmem:[%s3884_s0 + $0x60] sm:$0xff]  ;;  %v28_v60 = vld [vmem:[%s3884_s0 + $0x68] sm:$0xff] }
  0x1b   :  { %2016 = vmatmul.msk.f32.gmra.mxu2 %vm91_vm0, %v48_v14  ;;  %2032 = vmatmul.msk.f32.gmra.mxu3 %vm91_vm0, %v64_v15  ;;  %v43_v57 = vld [vmem:[%s3884_s0 + $0xe0] sm:$0xff]  ;;  %v44_v61 = vld [vmem:[%s3884_s0 + $0xe8] sm:$0xff]  ;;  %v29_v0 = vld [vmem:[%s3884_s0 + $0x70] sm:$0xff] }
  0x1c   :  { %v59_v58 = vld [vmem:[%s3884_s0 + $0x160] sm:$0xff]  ;;  %v60_v62 = vld [vmem:[%s3884_s0 + $0x168] sm:$0xff]  ;;  %v45_v1 = vld [vmem:[%s3884_s0 + $0xf0] sm:$0xff] }
  0x1d   :  { %v75_v59 = vld [vmem:[%s3884_s0 + $0x1e0] sm:$0xff]  ;;  %v76_v63 = vld [vmem:[%s3884_s0 + $0x1e8] sm:$0xff]  ;;  %v61_v2 = vld [vmem:[%s3884_s0 + $0x170] sm:$0xff] }
  0x1e   :  { %v77_v3 = vld [vmem:[%s3884_s0 + $0x1f0] sm:$0xff]  ;;  %v30_v4 = vld [vmem:[%s3884_s0 + $0x78] sm:$0xff]  ;;  %v2665_v8 = vld [vmem:[%s3886_s2] ss:$0 sm:$0xff] }
  0x1f   :  { %v46_v5 = vld [vmem:[%s3884_s0 + $0xf8] sm:$0xff] }
  0x20   :  { %v62_v6 = vld [vmem:[%s3884_s0 + $0x178] sm:$0xff] }
  0x21   :  { %v78_v7 = vld [vmem:[%s3884_s0 + $0x1f8] sm:$0xff] }
  0x22   :  { %1985 = vmatmul.msk.f32.gmra.mxu0 %vm91_vm0, %v17_v16  ;;  %2001 = vmatmul.msk.f32.gmra.mxu1 %vm91_vm0, %v33_v17 }
  0x23   :  { %2017 = vmatmul.msk.f32.gmra.mxu2 %vm91_vm0, %v49_v18  ;;  %2033 = vmatmul.msk.f32.gmra.mxu3 %vm91_vm0, %v65_v19 }
  0x2a   :  { %1986 = vmatmul.msk.f32.gmra.mxu0 %vm91_vm0, %v18_v20  ;;  %2002 = vmatmul.msk.f32.gmra.mxu1 %vm91_vm0, %v34_v21 }
  0x2b   :  { %2018 = vmatmul.msk.f32.gmra.mxu2 %vm91_vm0, %v50_v22  ;;  %2034 = vmatmul.msk.f32.gmra.mxu3 %vm91_vm0, %v66_v23 }
  0x32   :  { %1987 = vmatmul.msk.f32.gmra.mxu0 %vm91_vm0, %v19_v24  ;;  %2003 = vmatmul.msk.f32.gmra.mxu1 %vm91_vm0, %v35_v25 }
  0x33   :  { %2019 = vmatmul.msk.f32.gmra.mxu2 %vm91_vm0, %v51_v26  ;;  %2035 = vmatmul.msk.f32.gmra.mxu3 %vm91_vm0, %v67_v27 }
  0x3a   :  { %1988 = vmatmul.msk.f32.gmra.mxu0 %vm91_vm0, %v20_v28  ;;  %2004 = vmatmul.msk.f32.gmra.mxu1 %vm91_vm0, %v36_v29 }
  0x3b   :  { %2020 = vmatmul.msk.f32.gmra.mxu2 %vm91_vm0, %v52_v30  ;;  %2036 = vmatmul.msk.f32.gmra.mxu3 %vm91_vm0, %v68_v31 }
  0x42   :  { %1989 = vmatmul.msk.f32.gmra.mxu0 %vm91_vm0, %v21_v32  ;;  %2005 = vmatmul.msk.f32.gmra.mxu1 %vm91_vm0, %v37_v33 }
  0x43   :  { %2021 = vmatmul.msk.f32.gmra.mxu2 %vm91_vm0, %v53_v34  ;;  %2037 = vmatmul.msk.f32.gmra.mxu3 %vm91_vm0, %v69_v35 }
  0x4a   :  { %1990 = vmatmul.msk.f32.gmra.mxu0 %vm91_vm0, %v22_v36  ;;  %2006 = vmatmul.msk.f32.gmra.mxu1 %vm91_vm0, %v38_v37 }
  0x4b   :  { %2022 = vmatmul.msk.f32.gmra.mxu2 %vm91_vm0, %v54_v38  ;;  %2038 = vmatmul.msk.f32.gmra.mxu3 %vm91_vm0, %v70_v39 }
  0x52   :  { %1991 = vmatmul.msk.f32.gmra.mxu0 %vm91_vm0, %v23_v40  ;;  %2007 = vmatmul.msk.f32.gmra.mxu1 %vm91_vm0, %v39_v41 }
  0x53   :  { %2023 = vmatmul.msk.f32.gmra.mxu2 %vm91_vm0, %v55_v42  ;;  %2039 = vmatmul.msk.f32.gmra.mxu3 %vm91_vm0, %v71_v43 }
  0x5a   :  { %1992 = vmatmul.msk.f32.gmra.mxu0 %vm91_vm0, %v24_v44  ;;  %2008 = vmatmul.msk.f32.gmra.mxu1 %vm91_vm0, %v40_v45 }
  0x5b   :  { %2024 = vmatmul.msk.f32.gmra.mxu2 %vm91_vm0, %v56_v46  ;;  %2040 = vmatmul.msk.f32.gmra.mxu3 %vm91_vm0, %v72_v47 }
  0x62   :  { %1993 = vmatmul.msk.f32.gmra.mxu0 %vm91_vm0, %v25_v48  ;;  %2009 = vmatmul.msk.f32.gmra.mxu1 %vm91_vm0, %v41_v49 }
  0x63   :  { %2025 = vmatmul.msk.f32.gmra.mxu2 %vm91_vm0, %v57_v50  ;;  %2041 = vmatmul.msk.f32.gmra.mxu3 %vm91_vm0, %v73_v51 }
  0x6a   :  { %1994 = vmatmul.msk.f32.gmra.mxu0 %vm91_vm0, %v26_v52  ;;  %2010 = vmatmul.msk.f32.gmra.mxu1 %vm91_vm0, %v42_v53 }
  0x6b   :  { %2026 = vmatmul.msk.f32.gmra.mxu2 %vm91_vm0, %v58_v54  ;;  %2042 = vmatmul.msk.f32.gmra.mxu3 %vm91_vm0, %v74_v55 }
  0x72   :  { %1995 = vmatmul.msk.f32.gmra.mxu0 %vm91_vm0, %v27_v56  ;;  %2011 = vmatmul.msk.f32.gmra.mxu1 %vm91_vm0, %v43_v57 }
  0x73   :  { %2027 = vmatmul.msk.f32.gmra.mxu2 %vm91_vm0, %v59_v58  ;;  %2043 = vmatmul.msk.f32.gmra.mxu3 %vm91_vm0, %v75_v59 }
  0x7a   :  { %1996 = vmatmul.msk.f32.gmra.mxu0 %vm91_vm0, %v28_v60  ;;  %2012 = vmatmul.msk.f32.gmra.mxu1 %vm91_vm0, %v44_v61 }
  0x7b   :  { %2028 = vmatmul.msk.f32.gmra.mxu2 %vm91_vm0, %v60_v62  ;;  %2044 = vmatmul.msk.f32.gmra.mxu3 %vm91_vm0, %v76_v63 }
  0x82   :  { %1997 = vmatmul.msk.f32.gmra.mxu0 %vm91_vm0, %v29_v0  ;;  %2013 = vmatmul.msk.f32.gmra.mxu1 %vm91_vm0, %v45_v1 }
  0x83   :  { %2029 = vmatmul.msk.f32.gmra.mxu2 %vm91_vm0, %v61_v2  ;;  %2045 = vmatmul.msk.f32.gmra.mxu3 %vm91_vm0, %v77_v3 }
  0x8a   :  { %1998 = vmatmul.msk.f32.gmra.mxu0 %vm91_vm0, %v30_v4  ;;  %2014 = vmatmul.msk.f32.gmra.mxu1 %vm91_vm0, %v46_v5 }
  0x8b   :  { %2030 = vmatmul.msk.f32.gmra.mxu2 %vm91_vm0, %v62_v6  ;;  %2046 = vmatmul.msk.f32.gmra.mxu3 %vm91_vm0, %v78_v7 }
  0x8f   :  { %v301_v9 = vpop.f32.mrf.mxu0  ;;  %v349_v10 = vpop.f32.mrf.mxu1 }
  0x90   :  { %v2668_v11 = vadd.f32 %v2665_v8, %v301_v9  ;;  %v2671_v12 = vadd.f32 %v2665_v8, %v349_v10 }
  0x92   :  { %v493_v13 = vmul.f32 1.442695, %v2668_v11  ;;  %v525_v14 = vmul.f32 1.442695, %v2671_v12 }
  0x94   :  { %2075 = vpow2.f32 %v493_v13 }
  0x95   :  { %2077 = vpow2.f32 %v525_v14 }
  0x96   :  { %v397_v15 = vpop.f32.mrf.mxu2  ;;  %v445_v16 = vpop.f32.mrf.mxu3 }
  0x97   :  { %v2676_v17 = vadd.f32 %v2665_v8, %v397_v15  ;;  %v2679_v18 = vadd.f32 %v2665_v8, %v445_v16  ;;  %v304_v19 = vpop.f32.mrf.mxu0  ;;  %v352_v20 = vpop.f32.mrf.mxu1 }
  0x98   :  { %v2682_v21 = vadd.f32 %v2665_v8, %v304_v19  ;;  %v2685_v22 = vadd.f32 %v2665_v8, %v352_v20 }
  0x99   :  { %v557_v23 = vmul.f32 1.442695, %v2676_v17  ;;  %v589_v24 = vmul.f32 1.442695, %v2679_v18 }
  0x9a   :  { %v2076_v25 = vpop.eup %2075  ;;  %v495_v26 = vmul.f32 1.442695, %v2682_v21  ;;  %v527_v27 = vmul.f32 1.442695, %v2685_v22 }
  0x9b   :  { %v2078_v28 = vpop.eup %2077  ;;  %v621_v29 = vadd.f32 1.0, %v2076_v25  ;;  %2079 = vpow2.f32 %v557_v23 }
  0x9c   :  { %v637_v30 = vadd.f32 1.0, %v2078_v28  ;;  %2081 = vpow2.f32 %v589_v24 }
  0x9d   :  { %v685_v31 = vmul.f32 %v621_v29, %v621_v29  ;;  %2083 = vpow2.f32 %v495_v26 }
  0x9e   :  { %v701_v32 = vmul.f32 %v637_v30, %v637_v30  ;;  %2085 = vpow2.f32 %v527_v27  ;;  %v400_v33 = vpop.f32.mrf.mxu2  ;;  %v448_v34 = vpop.f32.mrf.mxu3 }
  0x9f   :  { %v2691_v35 = vadd.f32 1.0, %v685_v31  ;;  %v307_v36 = vpop.f32.mrf.mxu0  ;;  %v2696_v38 = vadd.f32 %v2665_v8, %v400_v33  ;;  %v355_v39 = vpop.f32.mrf.mxu1  ;;  %v2700_v41 = vadd.f32 %v2665_v8, %v448_v34 }
  0xa0   :  { %v2693_v37 = vadd.f32 1.0, %v701_v32  ;;  %v2704_v43 = vadd.f32 %v2665_v8, %v307_v36  ;;  %v2707_v47 = vadd.f32 %v2665_v8, %v355_v39 }
  0xa1   :  { %v2080_v40 = vpop.eup %2079  ;;  %2087 = vrcp.f32 %v2691_v35  ;;  %vm818_vm1 = vweird.f32 %v2691_v35  ;;  %v822_v49 = vand.u32 2147483647, %v2691_v35  ;;  %v559_v51 = vmul.f32 1.442695, %v2696_v38 }
  0xa2   :  { %v2082_v42 = vpop.eup %2081  ;;  %2089 = vrcp.f32 %v2693_v37  ;;  %v653_v45 = vadd.f32 1.0, %v2080_v40  ;;  %v824_v52 = vand.u32 2147483648, %v2691_v35  ;;  %v591_v55 = vmul.f32 1.442695, %v2700_v41 }
  0xa3   :  { %v2084_v44 = vpop.eup %2083  ;;  %v669_v46 = vadd.f32 1.0, %v2082_v42  ;;  %v1062_v56 = vand.u32 2147483647, %v2693_v37  ;;  %2091 = vpow2.f32 %v559_v51  ;;  %v497_v58 = vmul.f32 1.442695, %v2704_v43 }
  0xa4   :  { %v2086_v48 = vpop.eup %2085  ;;  %v622_v50 = vadd.f32 1.0, %v2084_v44  ;;  %v717_v53 = vmul.f32 %v653_v45, %v653_v45  ;;  %2093 = vpow2.f32 %v591_v55  ;;  %vm1058_vm2 = vweird.f32 %v2693_v37 }
  0xa5   :  { %v733_v54 = vmul.f32 %v669_v46, %v669_v46  ;;  %v638_v62 = vadd.f32 1.0, %v2086_v48  ;;  %2095 = vpow2.f32 %v497_v58  ;;  %vm2724_vm3 = vcmp.eq.f32.partialorder %v822_v49, 8.507059e+37 }
  0xa6   :  { %v686_v57 = vmul.f32 %v622_v50, %v622_v50  ;;  %v2716_v60 = vadd.f32 1.0, %v717_v53  ;;  %v1064_v4 = vand.u32 2147483648, %v2693_v37  ;;  %v825_v6 = vor.u32 1.1754944e-38, %v824_v52 }
  0xa7   :  { %v2088_v59 = vpop.eup %2087  ;;  %v2718_v61 = vadd.f32 1.0, %v733_v54  ;;  %vm2733_vm4 = vcmp.eq.f32.partialorder %v1062_v56, 8.507059e+37  ;;  %v702_v14 = vmul.f32 %v638_v62, %v638_v62  ;;  %v2743_v29 = vmul.f32 1.442695, %v2707_v47 }
  0xa8   :  { %v2090_v63 = vpop.eup %2089  ;;  %v814_v0 = vmul.f32 %v2088_v59, %v2691_v35  ;;  %v2722_v1 = vadd.f32 1.0, %v686_v57  ;;  %2097 = vrcp.f32 %v2716_v60  ;;  %v1304_v7 = vand.u32 2147483648, %v2716_v60 }
  0xa9   :  { %v1054_v3 = vmul.f32 %v2090_v63, %v2693_v37  ;;  %2099 = vrcp.f32 %v2718_v61  ;;  %v1544_v13 = vand.u32 2147483648, %v2718_v61  ;;  %v2092_v15 = vpop.eup %2091  ;;  %vm819_vm5 = vweird.f32 %v2088_v59 }
  0xaa   :  { %v815_v5 = vsub.f32 1.0, %v814_v0  ;;  %v1302_v19 = vand.u32 2147483647, %v2716_v60  ;;  %2101 = vrcp.f32 %v2722_v1  ;;  %v2094_v20 = vpop.eup %2093  ;;  %vm1059_vm6 = vweird.f32 %v2090_v63  ;;  %vm820_vm8 = vmor %vm818_vm1, %vm819_vm5 }
  0xab   :  { %v1055_v9 = vsub.f32 1.0, %v1054_v3  ;;  %v1065_v24 = vor.u32 1.1754944e-38, %v1064_v4  ;;  %v1542_v25 = vand.u32 2147483647, %v2718_v61  ;;  %v2096_v26 = vpop.eup %2095  ;;  %vm1298_vm7 = vweird.f32 %v2716_v60  ;;  %vm1060_vm11 = vmor %vm1058_vm2, %vm1059_vm6  ;;  %v358_v4 = vpop.f32.mrf.mxu1 }
  0xac   :  { %v816_v16 = vmul.f32 %v2088_v59, %v815_v5  ;;  %v1305_v28 = vor.u32 1.1754944e-38, %v1304_v7  ;;  %vm1538_vm9 = vweird.f32 %v2718_v61  ;;  %v1545_v32 = vor.u32 1.1754944e-38, %v1544_v13 }
  0xad   :  { %v1056_v23 = vmul.f32 %v2090_v63, %v1055_v9  ;;  %vm833_vm10 = vweird.f32 %v2722_v1  ;;  %v837_v33 = vand.u32 2147483647, %v2722_v1  ;;  %vm2754_vm12 = vcmp.eq.f32.partialorder %v1302_v19, 8.507059e+37 }
  0xae   :  { %v817_v27 = vadd.f32 %v2088_v59, %v816_v16  ;;  %v2098_v30 = vpop.eup %2097  ;;  %v839_v35 = vand.u32 2147483648, %v2722_v1  ;;  %v2759_v42 = vadd.f32 1.0, %v702_v14  ;;  %vm2764_vm13 = vcmp.eq.f32.partialorder %v1542_v25, 8.507059e+37 }
  0xaf   :  { %v1057_v31 = vadd.f32 %v2090_v63, %v1056_v23  ;;  %v2100_v34 = vpop.eup %2099  ;;  %v1294_v39 = vmul.f32 %v2098_v30, %v2716_v60  ;;  %v654_v37 = vadd.f32 1.0, %v2092_v15  ;;  %v670_v53 = vadd.f32 1.0, %v2094_v20 }
  0xb0   :  { %v821_v36 = vsel %vm820_vm8, %v2088_v59, %v817_v27  ;;  %v1534_v46 = vmul.f32 %v2100_v34, %v2718_v61  ;;  %v2102_v49 = vpop.eup %2101  ;;  %v623_v57 = vadd.f32 1.0, %v2096_v26  ;;  %vm1299_vm14 = vweird.f32 %v2098_v30 }
  0xb1   :  { %v826_v44 = vsel %vm2724_vm3, %v825_v6, %v821_v36  ;;  %v1061_v45 = vsel %vm1060_vm11, %v2090_v63, %v1057_v31  ;;  %v1295_v52 = vsub.f32 1.0, %v1294_v39  ;;  %v829_v56 = vmul.f32 %v2102_v49, %v2722_v1  ;;  %vm1300_vm1 = vmor %vm1298_vm7, %vm1299_vm14 }
  0xb2   :  { %v827_v50 = vmul.f32 2.0, %v826_v44  ;;  %v1066_v51 = vsel %vm2733_vm4, %v1065_v24, %v1061_v45  ;;  %v1535_v55 = vsub.f32 1.0, %v1534_v46  ;;  %2103 = vrcp.f32 %v2759_v42 }
  0xb3   :  { %v1067_v54 = vmul.f32 2.0, %v1066_v51  ;;  %v1296_v59 = vmul.f32 %v2098_v30, %v1295_v52  ;;  %vm1539_vm15 = vweird.f32 %v2100_v34  ;;  %v830_v0 = vsub.f32 1.0, %v829_v56  ;;  %v451_v52 = vpop.f32.mrf.mxu3  ;;  %v310_v56 = vpop.f32.mrf.mxu0 }
  0xb4   :  { %v1773_v58 = vsub.f32 1.0, %v827_v50  ;;  %v1536_v63 = vmul.f32 %v2100_v34, %v1535_v55  ;;  %vm2773_vm0 = vcmp.eq.f32.partialorder %v837_v33, 8.507059e+37  ;;  %v718_v5 = vmul.f32 %v654_v37, %v654_v37  ;;  %vm1540_vm3 = vmor %vm1538_vm9, %vm1539_vm15 }
  0xb5   :  { %v1789_v62 = vsub.f32 1.0, %v1067_v54  ;;  %v1297_v3 = vadd.f32 %v2098_v30, %v1296_v59  ;;  %v831_v9 = vmul.f32 %v2102_v49, %v830_v0  ;;  %vm834_vm2 = vweird.f32 %v2102_v49 }
  0xb6   :  { %v1837_v2 = vmul.f32 %v1773_v58, %v2668_v11  ;;  %v1537_v7 = vadd.f32 %v2100_v34, %v1536_v63  ;;  %v840_v11 = vor.u32 1.1754944e-38, %v839_v35  ;;  %vm1073_vm4 = vweird.f32 %v2759_v42  ;;  %vm835_vm5 = vmor %vm833_vm10, %vm834_vm2  ;;  %v403_v35 = vpop.f32.mrf.mxu2 }
  0xb7   :  { %v1853_v6 = vmul.f32 %v1789_v62, %v2671_v12  ;;  %v1301_v10 = vsel %vm1300_vm1, %v2098_v30, %v1297_v3  ;;  %v2783_v13 = vadd.f32 1.0, %v718_v5  ;;  %v832_v60 = vadd.f32 %v2102_v49, %v831_v9 }
  0xb8   :  { %1901 = vst [vmem:[#allocation2] sm:$0xff] %v1837_v2  ;;  %v1306_v12 = vsel %vm2754_vm12, %v1305_v28, %v1301_v10  ;;  %v1541_v14 = vsel %vm1540_vm3, %v2100_v34, %v1537_v7  ;;  %v734_v15 = vmul.f32 %v670_v53, %v670_v53  ;;  %v2104_v16 = vpop.eup %2103  ;;  %v687_v61 = vmul.f32 %v623_v57, %v623_v57 }
  0xb9   :  { %1917 = vst [vmem:[#allocation2 + $0x80] sm:$0xff] %v1853_v6  ;;  %v1307_v19 = vmul.f32 2.0, %v1306_v12  ;;  %v1546_v20 = vsel %vm2764_vm13, %v1545_v32, %v1541_v14  ;;  %2105 = vrcp.f32 %v2783_v13  ;;  %v836_v24 = vsel %vm835_vm5, %v2102_v49, %v832_v60 }
  0xba   :  { %v1547_v23 = vmul.f32 2.0, %v1546_v20  ;;  %v1069_v25 = vmul.f32 %v2104_v16, %v2759_v42  ;;  %v1077_v26 = vand.u32 2147483647, %v2759_v42  ;;  %v841_v28 = vsel %vm2773_vm0, %v840_v11, %v836_v24 }
  0xbb   :  { %v1805_v27 = vsub.f32 1.0, %v1307_v19  ;;  %v1079_v30 = vand.u32 2147483648, %v2759_v42  ;;  %v1317_v31 = vand.u32 2147483647, %v2783_v13  ;;  %v842_v1 = vmul.f32 2.0, %v841_v28 }
  0xbc   :  { %v1821_v32 = vsub.f32 1.0, %v1547_v23  ;;  %v1070_v33 = vsub.f32 1.0, %v1069_v25  ;;  %v2799_v34 = vadd.f32 1.0, %v734_v15  ;;  %vm1074_vm6 = vweird.f32 %v2104_v16 }
  0xbd   :  { %v1869_v36 = vmul.f32 %v1805_v27, %v2676_v17  ;;  %v1319_v39 = vand.u32 2147483648, %v2783_v13  ;;  %v2803_v40 = vadd.f32 1.0, %v687_v61  ;;  %v1774_v45 = vsub.f32 1.0, %v842_v1  ;;  %vm1075_vm10 = vmor %vm1073_vm4, %vm1074_vm6 }
  0xbe   :  { %v1885_v44 = vmul.f32 %v1821_v32, %v2679_v18  ;;  %v1071_v46 = vmul.f32 %v2104_v16, %v1070_v33  ;;  %2107 = vrcp.f32 %v2799_v34  ;;  %vm2807_vm7 = vcmp.eq.f32.partialorder %v1077_v26, 8.507059e+37  ;;  %v406_v19 = vpop.f32.mrf.mxu2  ;;  %v454_v32 = vpop.f32.mrf.mxu3 }
  0xbf   :  { %v2106_v48 = vpop.eup %2105  ;;  %1933 = vst [vmem:[#allocation2 + $0x100] sm:$0xff] %v1869_v36  ;;  %v1080_v49 = vor.u32 1.1754944e-38, %v1079_v30  ;;  %vm1313_vm8 = vweird.f32 %v2783_v13  ;;  %2109 = vrcp.f32 %v2803_v40  ;;  %v1838_v17 = vmul.f32 %v1774_v45, %v2682_v21 }
  0xc0   :  { %1949 = vst [vmem:[#allocation2 + $0x180] sm:$0xff] %v1885_v44  ;;  %v1072_v50 = vadd.f32 %v2104_v16, %v1071_v46  ;;  %v1309_v18 = vmul.f32 %v2106_v48, %v2783_v13  ;;  %vm2815_vm9 = vcmp.eq.f32.partialorder %v1317_v31, 8.507059e+37  ;;  %vm1314_vm11 = vweird.f32 %v2106_v48 }
  0xc1   :  { %v1320_v53 = vor.u32 1.1754944e-38, %v1319_v39  ;;  %v1557_v54 = vand.u32 2147483647, %v2799_v34  ;;  %v1559_v55 = vand.u32 2147483648, %v2799_v34  ;;  %1902 = vst [vmem:[#allocation2 + $0x8] sm:$0xff] %v1838_v17  ;;  %vm848_vm12 = vweird.f32 %v2803_v40  ;;  %vm1315_vm1 = vmor %vm1313_vm8, %vm1314_vm11 }
  0xc2   :  { %v1076_v21 = vsel %vm1075_vm10, %v2104_v16, %v1072_v50  ;;  %v1310_v57 = vsub.f32 1.0, %v1309_v18  ;;  %2111 = vpow2.f32 %v2743_v29  ;;  %vm1553_vm13 = vweird.f32 %v2799_v34 }
  0xc3   :  { %v1081_v58 = vsel %vm2807_vm7, %v1080_v49, %v1076_v21  ;;  %v852_v42 = vand.u32 2147483647, %v2803_v40  ;;  %v2831_v59 = vadd.f32 %v2665_v8, %v403_v35  ;;  %v2834_v62 = vadd.f32 %v2665_v8, %v451_v52 }
  0xc4   :  { %v2108_v63 = vpop.eup %2107  ;;  %v1082_v0 = vmul.f32 2.0, %v1081_v58  ;;  %v1311_v2 = vmul.f32 %v2106_v48, %v1310_v57  ;;  %v854_v3 = vand.u32 2147483648, %v2803_v40  ;;  %v2838_v29 = vadd.f32 %v2665_v8, %v310_v56 }
  0xc5   :  { %v2110_v5 = vpop.eup %2109  ;;  %v1549_v6 = vmul.f32 %v2108_v63, %v2799_v34  ;;  %vm1554_vm14 = vweird.f32 %v2108_v63  ;;  %vm2841_vm15 = vcmp.eq.f32.partialorder %v1557_v54, 8.507059e+37  ;;  %v561_v9 = vmul.f32 1.442695, %v2831_v59  ;;  %v313_v54 = vpop.f32.mrf.mxu0 }
  0xc6   :  { %v593_v10 = vmul.f32 1.442695, %v2834_v62  ;;  %v1790_v11 = vsub.f32 1.0, %v1082_v0  ;;  %v1312_v12 = vadd.f32 %v2106_v48, %v1311_v2  ;;  %v844_v14 = vmul.f32 %v2110_v5, %v2803_v40  ;;  %vm1555_vm3 = vmor %vm1553_vm13, %vm1554_vm14 }
  0xc7   :  { %vm849_vm0 = vweird.f32 %v2110_v5  ;;  %v1550_v60 = vsub.f32 1.0, %v1549_v6  ;;  %2113 = vpow2.f32 %v561_v9  ;;  %v499_v15 = vmul.f32 1.442695, %v2838_v29 }
  0xc8   :  { %v2853_v16 = vadd.f32 %v2665_v8, %v358_v4  ;;  %v2112_v20 = vpop.eup %2111  ;;  %v1854_v61 = vmul.f32 %v1790_v11, %v2685_v22  ;;  %v1316_v23 = vsel %vm1315_vm1, %v2106_v48, %v1312_v12  ;;  %v845_v24 = vsub.f32 1.0, %v844_v14  ;;  %vm850_vm4 = vmor %vm848_vm12, %vm849_vm0 }
  0xc9   :  { %2115 = vpow2.f32 %v593_v10  ;;  %v1321_v25 = vsel %vm2815_vm9, %v1320_v53, %v1316_v23  ;;  %v1551_v26 = vmul.f32 %v2108_v63, %v1550_v60  ;;  %v639_v13 = vadd.f32 1.0, %v2112_v20 }
  0xca   :  { %2117 = vpow2.f32 %v499_v15  ;;  %1918 = vst [vmem:[#allocation2 + $0x88] sm:$0xff] %v1854_v61  ;;  %v1322_v27 = vmul.f32 2.0, %v1321_v25  ;;  %v846_v28 = vmul.f32 %v2110_v5, %v845_v24  ;;  %v531_v30 = vmul.f32 1.442695, %v2853_v16 }
  0xcb   :  { %v2860_v31 = vadd.f32 %v2665_v8, %v406_v19  ;;  %v1552_v1 = vadd.f32 %v2108_v63, %v1551_v26  ;;  %v1560_v22 = vor.u32 1.1754944e-38, %v1559_v55  ;;  %vm2862_vm2 = vcmp.eq.f32.partialorder %v852_v42, 8.507059e+37 }
  0xcc   :  { %v703_v36 = vmul.f32 %v639_v13, %v639_v13  ;;  %v1806_v39 = vsub.f32 1.0, %v1322_v27  ;;  %v847_v35 = vadd.f32 %v2110_v5, %v846_v28  ;;  %v855_v44 = vor.u32 1.1754944e-38, %v854_v3 }
  0xcd   :  { %2119 = vpow2.f32 %v531_v30  ;;  %v2114_v45 = vpop.eup %2113  ;;  %v1556_v46 = vsel %vm1555_vm3, %v2108_v63, %v1552_v1  ;;  %v563_v37 = vmul.f32 1.442695, %v2860_v31  ;;  %v2876_v49 = vadd.f32 %v2665_v8, %v454_v32 }
  0xce   :  { %v2872_v48 = vadd.f32 1.0, %v703_v36  ;;  %v1870_v34 = vmul.f32 %v1806_v39, %v2696_v38  ;;  %v1561_v50 = vsel %vm2841_vm15, %v1560_v22, %v1556_v46  ;;  %v851_v18 = vsel %vm850_vm4, %v2110_v5, %v847_v35 }
  0xcf   :  { %v2116_v17 = vpop.eup %2115  ;;  %v655_v51 = vadd.f32 1.0, %v2114_v45  ;;  %v1562_v53 = vmul.f32 2.0, %v1561_v50  ;;  %v856_v40 = vsel %vm2862_vm2, %v855_v44, %v851_v18  ;;  %v595_v0 = vmul.f32 1.442695, %v2876_v49 }
  0xd0   :  { %v2118_v52 = vpop.eup %2117  ;;  %2121 = vrcp.f32 %v2872_v48  ;;  %1934 = vst [vmem:[#allocation2 + $0x108] sm:$0xff] %v1870_v34  ;;  %v857_v55 = vmul.f32 2.0, %v856_v40  ;;  %v671_v57 = vadd.f32 1.0, %v2116_v17  ;;  %v2888_v2 = vadd.f32 %v2665_v8, %v313_v54 }
  0xd1   :  { %v719_v56 = vmul.f32 %v655_v51, %v655_v51  ;;  %v1822_v21 = vsub.f32 1.0, %v1562_v53  ;;  %v624_v58 = vadd.f32 1.0, %v2118_v52  ;;  %2123 = vpow2.f32 %v563_v37 }
  0xd2   :  { %v1775_v42 = vsub.f32 1.0, %v857_v55  ;;  %v735_v4 = vmul.f32 %v671_v57, %v671_v57  ;;  %v1092_v9 = vand.u32 2147483647, %v2872_v48  ;;  %v1094_v11 = vand.u32 2147483648, %v2872_v48 }
  0xd3   :  { %v2120_v38 = vpop.eup %2119  ;;  %v2884_v63 = vadd.f32 1.0, %v719_v56  ;;  %v1886_v3 = vmul.f32 %v1822_v21, %v2700_v41  ;;  %v688_v5 = vmul.f32 %v624_v58, %v624_v58  ;;  %vm1088_vm5 = vweird.f32 %v2872_v48 }
  0xd4   :  { %v640_v6 = vadd.f32 1.0, %v2120_v38  ;;  %v1839_v7 = vmul.f32 %v1775_v42, %v2704_v43  ;;  %v2895_v12 = vadd.f32 1.0, %v735_v4  ;;  %v501_v19 = vmul.f32 1.442695, %v2888_v2 }
  0xd5   :  { %2125 = vrcp.f32 %v2884_v63  ;;  %1950 = vst [vmem:[#allocation2 + $0x188] sm:$0xff] %v1886_v3  ;;  %v2897_v14 = vadd.f32 1.0, %v688_v5  ;;  %v1332_v43 = vand.u32 2147483647, %v2884_v63  ;;  %vm2904_vm6 = vcmp.eq.f32.partialorder %v1092_v9, 8.507059e+37 }
  0xd6   :  { %v2122_v10 = vpop.eup %2121  ;;  %v704_v60 = vmul.f32 %v640_v6, %v640_v6  ;;  %1903 = vst [vmem:[#allocation2 + $0x10] sm:$0xff] %v1839_v7  ;;  %2127 = vpow2.f32 %v595_v0  ;;  %v1334_v23 = vand.u32 2147483648, %v2884_v63  ;;  %v1095_v24 = vor.u32 1.1754944e-38, %v1094_v11 }
  0xd7   :  { %v1084_v41 = vmul.f32 %v2122_v10, %v2872_v48  ;;  %v2124_v15 = vpop.eup %2123  ;;  %2129 = vrcp.f32 %v2895_v12  ;;  %vm1328_vm7 = vweird.f32 %v2884_v63  ;;  %v1574_v25 = vand.u32 2147483648, %v2895_v12 }
  0xd8   :  { %2131 = vrcp.f32 %v2897_v14  ;;  %v2912_v26 = vadd.f32 1.0, %v704_v60  ;;  %vm1089_vm8 = vweird.f32 %v2122_v10  ;;  %v1572_v28 = vand.u32 2147483647, %v2895_v12 }
  0xd9   :  { %v1085_v20 = vsub.f32 1.0, %v1084_v41  ;;  %v656_v30 = vadd.f32 1.0, %v2124_v15  ;;  %vm2916_vm9 = vcmp.eq.f32.partialorder %v1332_v43, 8.507059e+37  ;;  %v867_v22 = vand.u32 2147483647, %v2897_v14  ;;  %vm1090_vm11 = vmor %vm1088_vm5, %vm1089_vm8 }
  0xda   :  { %v869_v33 = vand.u32 2147483648, %v2897_v14  ;;  %2133 = vpow2.f32 %v501_v19  ;;  %v1335_v35 = vor.u32 1.1754944e-38, %v1334_v23  ;;  %vm1568_vm10 = vweird.f32 %v2895_v12 }
  0xdb   :  { %v2126_v13 = vpop.eup %2125  ;;  %v1086_v27 = vmul.f32 %v2122_v10, %v1085_v20  ;;  %2135 = vrcp.f32 %v2912_v26  ;;  %v1575_v46 = vor.u32 1.1754944e-38, %v1574_v25  ;;  %vm863_vm12 = vweird.f32 %v2897_v14  ;;  %v361_v20 = vpop.f32.mrf.mxu1 }
  0xdc   :  { %v1324_v32 = vmul.f32 %v2126_v13, %v2884_v63  ;;  %v2128_v36 = vpop.eup %2127  ;;  %v720_v37 = vmul.f32 %v656_v30, %v656_v30  ;;  %vm1329_vm13 = vweird.f32 %v2126_v13  ;;  %vm2928_vm14 = vcmp.eq.f32.partialorder %v1572_v28, 8.507059e+37 }
  0xdd   :  { %v1087_v39 = vadd.f32 %v2122_v10, %v1086_v27  ;;  %v2130_v44 = vpop.eup %2129  ;;  %v672_v51 = vadd.f32 1.0, %v2128_v36  ;;  %vm2935_vm15 = vcmp.eq.f32.partialorder %v867_v22, 8.507059e+37  ;;  %v870_v54 = vor.u32 1.1754944e-38, %v869_v33  ;;  %vm1330_vm2 = vmor %vm1328_vm7, %vm1329_vm13  ;;  %v409_v27 = vpop.f32.mrf.mxu2 }
  0xde   :  { %v1325_v45 = vsub.f32 1.0, %v1324_v32  ;;  %v2132_v17 = vpop.eup %2131  ;;  %v1564_v50 = vmul.f32 %v2130_v44, %v2895_v12  ;;  %vm1103_vm0 = vweird.f32 %v2912_v26  ;;  %v2940_v21 = vadd.f32 1.0, %v720_v37 }
  0xdf   :  { %v1091_v34 = vsel %vm1090_vm11, %v2122_v10, %v1087_v39  ;;  %v859_v53 = vmul.f32 %v2132_v17, %v2897_v14  ;;  %vm1569_vm1 = vweird.f32 %v2130_v44  ;;  %v1107_v42 = vand.u32 2147483647, %v2912_v26 }
  0xe0   :  { %v1096_v52 = vsel %vm2904_vm6, %v1095_v24, %v1091_v34  ;;  %v1326_v48 = vmul.f32 %v2126_v13, %v1325_v45  ;;  %v1565_v56 = vsub.f32 1.0, %v1564_v50  ;;  %v2134_v57 = vpop.eup %2133  ;;  %2137 = vrcp.f32 %v2940_v21  ;;  %vm1570_vm4 = vmor %vm1568_vm10, %vm1569_vm1 }
  0xe1   :  { %v1097_v55 = vmul.f32 2.0, %v1096_v52  ;;  %v860_v38 = vsub.f32 1.0, %v859_v53  ;;  %v2136_v0 = vpop.eup %2135  ;;  %v736_v5 = vmul.f32 %v672_v51, %v672_v51  ;;  %vm864_vm3 = vweird.f32 %v2132_v17  ;;  %v316_v53 = vpop.f32.mrf.mxu0 }
  0xe2   :  { %v1327_v58 = vadd.f32 %v2126_v13, %v1326_v48  ;;  %v1566_v4 = vmul.f32 %v2130_v44, %v1565_v56  ;;  %v1099_v9 = vmul.f32 %v2136_v0, %v2912_v26  ;;  %v625_v41 = vadd.f32 1.0, %v2134_v57  ;;  %vm865_vm5 = vmor %vm863_vm12, %vm864_vm3 }
  0xe3   :  { %v1791_v3 = vsub.f32 1.0, %v1097_v55  ;;  %v861_v7 = vmul.f32 %v2132_v17, %v860_v38  ;;  %v1109_v19 = vand.u32 2147483648, %v2912_v26  ;;  %vm1104_vm6 = vweird.f32 %v2136_v0 }
  0xe4   :  { %v1331_v6 = vsel %vm1330_vm2, %v2126_v13, %v1327_v58  ;;  %v1567_v60 = vadd.f32 %v2130_v44, %v1566_v4  ;;  %v1100_v43 = vsub.f32 1.0, %v1099_v9  ;;  %vm2957_vm7 = vcmp.eq.f32.partialorder %v1107_v42, 8.507059e+37  ;;  %vm1105_vm8 = vmor %vm1103_vm0, %vm1104_vm6  ;;  %v364_v58 = vpop.f32.mrf.mxu1 }
  0xe5   :  { %v1855_v10 = vmul.f32 %v1791_v3, %v2707_v47  ;;  %v1336_v11 = vsel %vm2916_vm9, %v1335_v35, %v1331_v6  ;;  %v862_v63 = vadd.f32 %v2132_v17, %v861_v7  ;;  %v2961_v23 = vadd.f32 1.0, %v736_v5 }
  0xe6   :  { %v1337_v15 = vmul.f32 2.0, %v1336_v11  ;;  %v1571_v61 = vsel %vm1570_vm4, %v2130_v44, %v1567_v60  ;;  %v1101_v13 = vmul.f32 %v2136_v0, %v1100_v43  ;;  %v2138_v28 = vpop.eup %2137  ;;  %v689_v32 = vmul.f32 %v625_v41, %v625_v41 }
  0xe7   :  { %1919 = vst [vmem:[#allocation2 + $0x90] sm:$0xff] %v1855_v10  ;;  %v1576_v12 = vsel %vm2928_vm14, %v1575_v46, %v1571_v61  ;;  %v866_v25 = vsel %vm865_vm5, %v2132_v17, %v862_v63  ;;  %2139 = vrcp.f32 %v2961_v23  ;;  %v1339_v36 = vmul.f32 %v2138_v28, %v2940_v21 }
  0xe8   :  { %v1807_v24 = vsub.f32 1.0, %v1337_v15  ;;  %v1577_v30 = vmul.f32 2.0, %v1576_v12  ;;  %v871_v14 = vsel %vm2935_vm15, %v870_v54, %v866_v25  ;;  %v1102_v33 = vadd.f32 %v2136_v0, %v1101_v13 }
  0xe9   :  { %v872_v22 = vmul.f32 2.0, %v871_v14  ;;  %v1110_v35 = vor.u32 1.1754944e-38, %v1109_v19  ;;  %v1347_v44 = vand.u32 2147483647, %v2940_v21  ;;  %v1349_v45 = vand.u32 2147483648, %v2940_v21 }
  0xea   :  { %v1871_v1 = vmul.f32 %v1807_v24, %v2831_v59  ;;  %v1823_v39 = vsub.f32 1.0, %v1577_v30  ;;  %v1106_v37 = vsel %vm1105_vm8, %v2136_v0, %v1102_v33  ;;  %v1340_v17 = vsub.f32 1.0, %v1339_v36  ;;  %v457_v59 = vpop.f32.mrf.mxu3 }
  0xeb   :  { %v1776_v46 = vsub.f32 1.0, %v872_v22  ;;  %vm1343_vm9 = vweird.f32 %v2940_v21  ;;  %v1111_v50 = vsel %vm2957_vm7, %v1110_v35, %v1106_v37  ;;  %v1587_v26 = vand.u32 2147483647, %v2961_v23  ;;  %v412_v21 = vpop.f32.mrf.mxu2 }
  0xec   :  { %1935 = vst [vmem:[#allocation2 + $0x110] sm:$0xff] %v1871_v1  ;;  %v1887_v34 = vmul.f32 %v1823_v39, %v2834_v62  ;;  %v2980_v18 = vadd.f32 1.0, %v689_v32  ;;  %v1112_v52 = vmul.f32 2.0, %v1111_v50  ;;  %v1341_v48 = vmul.f32 %v2138_v28, %v1340_v17  ;;  %v319_v32 = vpop.f32.mrf.mxu0  ;;  %v367_v39 = vpop.f32.mrf.mxu1 }
  0xed   :  { %v1840_v51 = vmul.f32 %v1776_v46, %v2838_v29  ;;  %vm1344_vm10 = vweird.f32 %v2138_v28  ;;  %v2140_v40 = vpop.eup %2139  ;;  %vm2983_vm11 = vcmp.eq.f32.partialorder %v1347_v44, 8.507059e+37  ;;  %v1350_v62 = vor.u32 1.1754944e-38, %v1349_v45 }
  0xee   :  { %1951 = vst [vmem:[#allocation2 + $0x190] sm:$0xff] %v1887_v34  ;;  %vm1583_vm12 = vweird.f32 %v2961_v23  ;;  %2141 = vrcp.f32 %v2980_v18  ;;  %v1792_v55 = vsub.f32 1.0, %v1112_v52  ;;  %v1342_v56 = vadd.f32 %v2138_v28, %v1341_v48  ;;  %vm1345_vm13 = vmor %vm1343_vm9, %vm1344_vm10 }
  0xef   :  { %1904 = vst [vmem:[#allocation2 + $0x18] sm:$0xff] %v1840_v51  ;;  %v1579_v29 = vmul.f32 %v2140_v40, %v2961_v23  ;;  %v1589_v57 = vand.u32 2147483648, %v2961_v23  ;;  %vm1584_vm14 = vweird.f32 %v2140_v40  ;;  %vm2993_vm15 = vcmp.eq.f32.partialorder %v1587_v26, 8.507059e+37 }
  0xf0   :  { %v2998_v42 = vadd.f32 %v2665_v8, %v361_v20  ;;  %v3001_v0 = vadd.f32 %v2665_v8, %v409_v27  ;;  %v1856_v3 = vmul.f32 %v1792_v55, %v2853_v16  ;;  %v1346_v4 = vsel %vm1345_vm13, %v2138_v28, %v1342_v56  ;;  %vm1585_vm1 = vmor %vm1583_vm12, %vm1584_vm14 }
  0xf1   :  { %v1580_v5 = vsub.f32 1.0, %v1579_v29  ;;  %v3005_v6 = vadd.f32 %v2665_v8, %v457_v59  ;;  %v1351_v7 = vsel %vm2983_vm11, %v1350_v62, %v1346_v4  ;;  %v3012_v11 = vadd.f32 %v2665_v8, %v316_v53 }
  0xf2   :  { %v533_v9 = vmul.f32 1.442695, %v2998_v42  ;;  %v565_v10 = vmul.f32 1.442695, %v3001_v0  ;;  %1920 = vst [vmem:[#allocation2 + $0x98] sm:$0xff] %v1856_v3  ;;  %v1352_v60 = vmul.f32 2.0, %v1351_v7  ;;  %v3016_v15 = vadd.f32 %v2665_v8, %v364_v58  ;;  %v460_v12 = vpop.f32.mrf.mxu3 }
  0xf3   :  { %v1581_v41 = vmul.f32 %v2140_v40, %v1580_v5  ;;  %v597_v16 = vmul.f32 1.442695, %v3005_v6  ;;  %v1590_v43 = vor.u32 1.1754944e-38, %v1589_v57  ;;  %v503_v19 = vmul.f32 1.442695, %v3012_v11  ;;  %v415_v37 = vpop.f32.mrf.mxu2 }
  0xf4   :  { %v2142_v63 = vpop.eup %2141  ;;  %2143 = vpow2.f32 %v533_v9  ;;  %v3020_v20 = vadd.f32 %v2665_v8, %v412_v21  ;;  %v1808_v61 = vsub.f32 1.0, %v1352_v60  ;;  %vm878_vm0 = vweird.f32 %v2980_v18 }
  0xf5   :  { %v1582_v47 = vadd.f32 %v2140_v40, %v1581_v41  ;;  %v874_v24 = vmul.f32 %v2142_v63, %v2980_v18  ;;  %v882_v25 = vand.u32 2147483647, %v2980_v18  ;;  %v884_v13 = vand.u32 2147483648, %v2980_v18 }
  0xf6   :  { %2145 = vpow2.f32 %v565_v10  ;;  %v535_v27 = vmul.f32 1.442695, %v3016_v15  ;;  %v1872_v28 = vmul.f32 %v1808_v61, %v2860_v31  ;;  %v567_v23 = vmul.f32 1.442695, %v3020_v20 }
  0xf7   :  { %v1586_v30 = vsel %vm1585_vm1, %v2140_v40, %v1582_v47  ;;  %v875_v14 = vsub.f32 1.0, %v874_v24  ;;  %2147 = vpow2.f32 %v597_v16  ;;  %v3035_v22 = vadd.f32 %v2665_v8, %v460_v12 }
  0xf8   :  { %v1591_v1 = vsel %vm2993_vm15, %v1590_v43, %v1586_v30  ;;  %2149 = vpow2.f32 %v503_v19  ;;  %1936 = vst [vmem:[#allocation2 + $0x118] sm:$0xff] %v1872_v28  ;;  %vm879_vm2 = vweird.f32 %v2142_v63  ;;  %v3038_v35 = vadd.f32 %v2665_v8, %v319_v32 }
  0xf9   :  { %v1592_v33 = vmul.f32 2.0, %v1591_v1  ;;  %v876_v36 = vmul.f32 %v2142_v63, %v875_v14  ;;  %2151 = vpow2.f32 %v535_v27  ;;  %vm883_vm3 = vcmp.eq.f32.partialorder %v882_v25, 8.507059e+37  ;;  %vm880_vm4 = vmor %vm878_vm0, %vm879_vm2 }
  0xfa   :  { %v2144_v31 = vpop.eup %2143  ;;  %v885_v59 = vor.u32 1.1754944e-38, %v884_v13  ;;  %2153 = vpow2.f32 %v567_v23  ;;  %v599_v34 = vmul.f32 1.442695, %v3035_v22  ;;  %v3044_v50 = vadd.f32 %v2665_v8, %v367_v39 }
  0xfb   :  { %v1824_v44 = vsub.f32 1.0, %v1592_v33  ;;  %v877_v45 = vadd.f32 %v2142_v63, %v876_v36  ;;  %v641_v46 = vadd.f32 1.0, %v2144_v31  ;;  %v505_v55 = vmul.f32 1.442695, %v3038_v35 }
  0xfc   :  { %v2146_v17 = vpop.eup %2145  ;;  %v3049_v18 = vadd.f32 %v2665_v8, %v415_v37  ;;  %2155 = vpow2.f32 %v599_v34  ;;  %v537_v9 = vmul.f32 1.442695, %v3044_v50 }
  0xfd   :  { %v2148_v26 = vpop.eup %2147  ;;  %v1888_v51 = vmul.f32 %v1824_v44, %v2876_v49  ;;  %v881_v52 = vsel %vm880_vm4, %v2142_v63, %v877_v45  ;;  %v705_v48 = vmul.f32 %v641_v46, %v641_v46  ;;  %v657_v53 = vadd.f32 1.0, %v2146_v17 }
  0xfe   :  { %v2150_v40 = vpop.eup %2149  ;;  %v886_v54 = vsel %vm883_vm3, %v885_v59, %v881_v52  ;;  %v673_v62 = vadd.f32 1.0, %v2148_v26  ;;  %v569_v41 = vmul.f32 1.442695, %v3049_v18 }
  0xff   :  { %v2152_v56 = vpop.eup %2151  ;;  %1952 = vst [vmem:[#allocation2 + $0x198] sm:$0xff] %v1888_v51  ;;  %v887_v29 = vmul.f32 2.0, %v886_v54  ;;  %v3051_v57 = vadd.f32 1.0, %v705_v48  ;;  %v721_v58 = vmul.f32 %v657_v53, %v657_v53  ;;  %v626_v38 = vadd.f32 1.0, %v2150_v40 }
 0x100   :  { %v737_v3 = vmul.f32 %v673_v62, %v673_v62  ;;  %v642_v49 = vadd.f32 1.0, %v2152_v56  ;;  %v2154_v5 = vpop.eup %2153 }
 0x101   :  { %v1777_v4 = vsub.f32 1.0, %v887_v29  ;;  %2157 = vrcp.f32 %v3051_v57  ;;  %v3054_v21 = vadd.f32 1.0, %v721_v58  ;;  %v690_v8 = vmul.f32 %v626_v38, %v626_v38 }
 0x102   :  { %v3056_v7 = vadd.f32 1.0, %v737_v3  ;;  %v706_v60 = vmul.f32 %v642_v49, %v642_v49  ;;  %2159 = vpow2.f32 %v505_v55  ;;  %v1122_v16 = vand.u32 2147483647, %v3051_v57  ;;  %v2156_v61 = vpop.eup %2155 }
 0x103   :  { %v1841_v10 = vmul.f32 %v1777_v4, %v2888_v2  ;;  %v1124_v63 = vand.u32 2147483648, %v3051_v57  ;;  %2161 = vrcp.f32 %v3054_v21  ;;  %v1364_v43 = vand.u32 2147483648, %v3054_v21 }
 0x104   :  { %2163 = vrcp.f32 %v3056_v7  ;;  %v658_v19 = vadd.f32 1.0, %v2154_v5  ;;  %v3066_v47 = vadd.f32 1.0, %v690_v8  ;;  %v3068_v2 = vadd.f32 1.0, %v706_v60 }
 0x105   :  { %1905 = vst [vmem:[#allocation2 + $0x20] sm:$0xff] %v1841_v10  ;;  %2165 = vpow2.f32 %v537_v9  ;;  %vm1118_vm5 = vweird.f32 %v3051_v57  ;;  %v1362_v12 = vand.u32 2147483647, %v3054_v21  ;;  %v1604_v25 = vand.u32 2147483648, %v3056_v7 }
 0x106   :  { %2167 = vpow2.f32 %v569_v41  ;;  %vm3074_vm6 = vcmp.eq.f32.partialorder %v1122_v16, 8.507059e+37  ;;  %v1125_v28 = vor.u32 1.1754944e-38, %v1124_v63  ;;  %v1602_v30 = vand.u32 2147483647, %v3056_v7 }
 0x107   :  { %v2158_v24 = vpop.eup %2157  ;;  %2169 = vrcp.f32 %v3066_v47  ;;  %vm1358_vm7 = vweird.f32 %v3054_v21  ;;  %v1365_v32 = vor.u32 1.1754944e-38, %v1364_v43  ;;  %v722_v1 = vmul.f32 %v658_v19, %v658_v19 }
 0x108   :  { %v1114_v13 = vmul.f32 %v2158_v24, %v3051_v57  ;;  %v2160_v14 = vpop.eup %2159  ;;  %2171 = vrcp.f32 %v3068_v2  ;;  %vm1119_vm8 = vweird.f32 %v2158_v24  ;;  %vm1598_vm9 = vweird.f32 %v3056_v7 }
 0x109   :  { %v2162_v23 = vpop.eup %2161  ;;  %v899_v36 = vand.u32 2147483648, %v3066_v47  ;;  %v674_v39 = vadd.f32 1.0, %v2156_v61  ;;  %vm3085_vm10 = vcmp.eq.f32.partialorder %v1362_v12, 8.507059e+37  ;;  %v1605_v46 = vor.u32 1.1754944e-38, %v1604_v25  ;;  %vm1120_vm0 = vmor %vm1118_vm5, %vm1119_vm8 }
 0x10a   :  { %v1115_v33 = vsub.f32 1.0, %v1114_v13  ;;  %v2164_v31 = vpop.eup %2163  ;;  %v1354_v44 = vmul.f32 %v2162_v23, %v3054_v21  ;;  %v897_v37 = vand.u32 2147483647, %v3066_v47  ;;  %v1139_v17 = vand.u32 2147483648, %v3068_v2 }
 0x10b   :  { %v2166_v59 = vpop.eup %2165  ;;  %v1594_v26 = vmul.f32 %v2164_v31, %v3056_v7  ;;  %vm3092_vm11 = vcmp.eq.f32.partialorder %v1602_v30, 8.507059e+37  ;;  %vm893_vm12 = vweird.f32 %v3066_v47  ;;  %v1137_v52 = vand.u32 2147483647, %v3068_v2 }
 0x10c   :  { %v1116_v34 = vmul.f32 %v2158_v24, %v1115_v33  ;;  %v3098_v48 = vpop.eup %2167  ;;  %v1355_v53 = vsub.f32 1.0, %v1354_v44  ;;  %vm1359_vm13 = vweird.f32 %v2162_v23  ;;  %vm1133_vm14 = vweird.f32 %v3068_v2 }
 0x10d   :  { %v3101_v40 = vadd.f32 1.0, %v722_v1  ;;  %v2170_v54 = vpop.eup %2169  ;;  %v1595_v55 = vsub.f32 1.0, %v1594_v26  ;;  %vm1599_vm15 = vweird.f32 %v2164_v31  ;;  %v900_v56 = vor.u32 1.1754944e-38, %v899_v36  ;;  %vm1360_vm3 = vmor %vm1358_vm7, %vm1359_vm13 }
 0x10e   :  { %v1117_v62 = vadd.f32 %v2158_v24, %v1116_v34  ;;  %v2172_v29 = vpop.eup %2171  ;;  %v1356_v58 = vmul.f32 %v2162_v23, %v1355_v53  ;;  %v889_v38 = vmul.f32 %v2170_v54, %v3066_v47  ;;  %vm3107_vm1 = vcmp.eq.f32.partialorder %v897_v37, 8.507059e+37  ;;  %vm1600_vm4 = vmor %vm1598_vm9, %vm1599_vm15 }
 0x10f   :  { %v1140_v49 = vor.u32 1.1754944e-38, %v1139_v17  ;;  %2173 = vrcp.f32 %v3101_v40  ;;  %v1596_v5 = vmul.f32 %v2164_v31, %v1595_v55  ;;  %v1129_v8 = vmul.f32 %v2172_v29, %v3068_v2  ;;  %v463_v17 = vpop.f32.mrf.mxu3 }
 0x110   :  { %v1121_v4 = vsel %vm1120_vm0, %v2158_v24, %v1117_v62  ;;  %vm3113_vm2 = vcmp.eq.f32.partialorder %v1137_v52, 8.507059e+37  ;;  %v738_v57 = vmul.f32 %v674_v39, %v674_v39  ;;  %v1357_v60 = vadd.f32 %v2162_v23, %v1356_v58 }
 0x111   :  { %v1126_v10 = vsel %vm3074_vm6, %v1125_v28, %v1121_v4  ;;  %v890_v41 = vsub.f32 1.0, %v889_v38  ;;  %v627_v16 = vadd.f32 1.0, %v2160_v14  ;;  %v1597_v43 = vadd.f32 %v2164_v31, %v1596_v5 }
 0x112   :  { %v1127_v63 = vmul.f32 2.0, %v1126_v10  ;;  %v1130_v19 = vsub.f32 1.0, %v1129_v8  ;;  %v643_v61 = vadd.f32 1.0, %v2166_v59  ;;  %v1361_v24 = vsel %vm1360_vm3, %v2162_v23, %v1357_v60  ;;  %v322_v60 = vpop.f32.mrf.mxu0 }
 0x113   :  { %v891_v12 = vmul.f32 %v2170_v54, %v890_v41  ;;  %vm894_vm5 = vweird.f32 %v2170_v54  ;;  %vm1134_vm8 = vweird.f32 %v2172_v29  ;;  %v1366_v13 = vsel %vm3085_vm10, %v1365_v32, %v1361_v24 }
 0x114   :  { %v1793_v25 = vsub.f32 1.0, %v1127_v63  ;;  %v1601_v27 = vsel %vm1600_vm4, %v2164_v31, %v1597_v43  ;;  %v1131_v28 = vmul.f32 %v2172_v29, %v1130_v19  ;;  %v1367_v21 = vmul.f32 2.0, %v1366_v13  ;;  %vm895_vm6 = vmor %vm893_vm12, %vm894_vm5 }
 0x115   :  { %v2174_v30 = vpop.eup %2173  ;;  %v1606_v14 = vsel %vm3092_vm11, %v1605_v46, %v1601_v27  ;;  %v892_v1 = vadd.f32 %v2170_v54, %v891_v12  ;;  %v3129_v23 = vadd.f32 1.0, %v738_v57  ;;  %vm1135_vm7 = vmor %vm1133_vm14, %vm1134_vm8  ;;  %v1377_v44 = vand.u32 2147483647, %v3101_v40 }
 0x116   :  { %v1857_v7 = vmul.f32 %v1793_v25, %v2998_v42  ;;  %v1607_v33 = vmul.f32 2.0, %v1606_v14  ;;  %v1132_v36 = vadd.f32 %v2172_v29, %v1131_v28  ;;  %v1369_v39 = vmul.f32 %v2174_v30, %v3101_v40 }
 0x117   :  { %v1809_v32 = vsub.f32 1.0, %v1367_v21  ;;  %v896_v31 = vsel %vm895_vm6, %v2170_v54, %v892_v1  ;;  %v1379_v45 = vand.u32 2147483648, %v3101_v40  ;;  %2175 = vrcp.f32 %v3129_v23  ;;  %v418_v21 = vpop.f32.mrf.mxu2 }
 0x118   :  { %1921 = vst [vmem:[#allocation2 + $0xa0] sm:$0xff] %v1857_v7  ;;  %v1825_v46 = vsub.f32 1.0, %v1607_v33  ;;  %v901_v42 = vsel %vm3107_vm1, %v900_v56, %v896_v31  ;;  %v1136_v47 = vsel %vm1135_vm7, %v2172_v29, %v1132_v36  ;;  %v1370_v37 = vsub.f32 1.0, %v1369_v39 }
 0x119   :  { %v1873_v59 = vmul.f32 %v1809_v32, %v3001_v0  ;;  %v902_v34 = vmul.f32 2.0, %v901_v42  ;;  %v1141_v26 = vsel %vm3113_vm2, %v1140_v49, %v1136_v47  ;;  %vm1374_vm9 = vweird.f32 %v2174_v30  ;;  %v3151_v0 = vld [vmem:[%s3886_s2] ss:$0 sm:$0xff]  ;;  %v466_v32 = vpop.f32.mrf.mxu3 }
 0x11a   :  { %v1889_v2 = vmul.f32 %v1825_v46, %v3005_v6  ;;  %v1142_v51 = vmul.f32 2.0, %v1141_v26  ;;  %v1371_v52 = vmul.f32 %v2174_v30, %v1370_v37  ;;  %vm1373_vm10 = vweird.f32 %v3101_v40 }
 0x11b   :  { %1937 = vst [vmem:[#allocation2 + $0x120] sm:$0xff] %v1873_v59  ;;  %v1778_v53 = vsub.f32 1.0, %v902_v34  ;;  %v691_v54 = vmul.f32 %v627_v16, %v627_v16  ;;  %v3154_v62 = vadd.f32 %v3151_v0, %v463_v17  ;;  %v707_v6 = vmul.f32 %v643_v61, %v643_v61  ;;  %vm1375_vm11 = vmor %vm1373_vm10, %vm1374_vm9 }
 0x11c   :  { %1953 = vst [vmem:[#allocation2 + $0x1a0] sm:$0xff] %v1889_v2  ;;  %v1794_v55 = vsub.f32 1.0, %v1142_v51  ;;  %v1372_v56 = vadd.f32 %v2174_v30, %v1371_v52  ;;  %v659_v29 = vadd.f32 1.0, %v3098_v48  ;;  %v1380_v38 = vor.u32 1.1754944e-38, %v1379_v45 }
 0x11d   :  { %v1842_v58 = vmul.f32 %v1778_v53, %v3012_v11  ;;  %v1617_v40 = vand.u32 2147483647, %v3129_v23  ;;  %v3159_v3 = vadd.f32 1.0, %v691_v54  ;;  %vm1378_vm12 = vcmp.eq.f32.partialorder %v1377_v44, 8.507059e+37  ;;  %v2176_v8 = vpop.eup %2175 }
 0x11e   :  { %v1858_v49 = vmul.f32 %v1794_v55, %v3016_v15  ;;  %v1376_v4 = vsel %vm1375_vm11, %v2174_v30, %v1372_v56  ;;  %v3162_v5 = vadd.f32 1.0, %v707_v6  ;;  %v723_v48 = vmul.f32 %v659_v29, %v659_v29  ;;  %v370_v15 = vpop.f32.mrf.mxu1  ;;  %v325_v55 = vpop.f32.mrf.mxu0 }
 0x11f   :  { %1906 = vst [vmem:[#allocation2 + $0x28] sm:$0xff] %v1842_v58  ;;  %v1381_v9 = vsel %vm1378_vm12, %v1380_v38, %v1376_v4  ;;  %2177 = vrcp.f32 %v3159_v3  ;;  %v601_v11 = vmul.f32 1.442695, %v3154_v62  ;;  %v1609_v10 = vmul.f32 %v2176_v8, %v3129_v23 }
 0x120   :  { %1922 = vst [vmem:[#allocation2 + $0xa8] sm:$0xff] %v1858_v49  ;;  %v1382_v57 = vmul.f32 2.0, %v1381_v9  ;;  %vm1613_vm13 = vweird.f32 %v3129_v23  ;;  %vm3168_vm14 = vcmp.eq.f32.partialorder %v1617_v40, 8.507059e+37  ;;  %v1619_v16 = vand.u32 2147483648, %v3129_v23 }
 0x121   :  { %v912_v63 = vand.u32 2147483647, %v3159_v3  ;;  %2179 = vrcp.f32 %v3162_v5  ;;  %v1610_v19 = vsub.f32 1.0, %v1609_v10  ;;  %vm1614_vm15 = vweird.f32 %v2176_v8 }
 0x122   :  { %v1810_v43 = vsub.f32 1.0, %v1382_v57  ;;  %v914_v61 = vand.u32 2147483648, %v3159_v3  ;;  %v1154_v24 = vand.u32 2147483648, %v3162_v5  ;;  %v3177_v12 = vadd.f32 1.0, %v723_v48  ;;  %vm1615_vm3 = vmor %vm1613_vm13, %vm1614_vm15 }
 0x123   :  { %2181 = vpow2.f32 %v601_v11  ;;  %v3180_v25 = vadd.f32 %v3151_v0, %v322_v60  ;;  %v1611_v27 = vmul.f32 %v2176_v8, %v1610_v19  ;;  %v1152_v28 = vand.u32 2147483647, %v3162_v5 }
 0x124   :  { %v1874_v13 = vmul.f32 %v1810_v43, %v3020_v20  ;;  %v3185_v30 = vadd.f32 %v3151_v0, %v370_v15  ;;  %v1620_v1 = vor.u32 1.1754944e-38, %v1619_v16  ;;  %vm908_vm0 = vweird.f32 %v3159_v3 }
 0x125   :  { %v2178_v14 = vpop.eup %2177  ;;  %vm1148_vm1 = vweird.f32 %v3162_v5  ;;  %2183 = vrcp.f32 %v3177_v12  ;;  %v1612_v7 = vadd.f32 %v2176_v8, %v1611_v27  ;;  %vm3191_vm2 = vcmp.eq.f32.partialorder %v912_v63, 8.507059e+37 }
 0x126   :  { %1938 = vst [vmem:[#allocation2 + $0x128] sm:$0xff] %v1874_v13  ;;  %v904_v33 = vmul.f32 %v2178_v14, %v3159_v3  ;;  %v915_v36 = vor.u32 1.1754944e-38, %v914_v61  ;;  %v507_v39 = vmul.f32 1.442695, %v3180_v25  ;;  %v1155_v44 = vor.u32 1.1754944e-38, %v1154_v24  ;;  %v373_v56 = vpop.f32.mrf.mxu1 }
 0x127   :  { %v2180_v31 = vpop.eup %2179  ;;  %v1392_v45 = vand.u32 2147483647, %v3177_v12  ;;  %v539_v46 = vmul.f32 1.442695, %v3185_v30  ;;  %v3202_v42 = vadd.f32 %v3151_v0, %v418_v21  ;;  %v1616_v47 = vsel %vm1615_vm3, %v2176_v8, %v1612_v7 }
 0x128   :  { %v905_v37 = vsub.f32 1.0, %v904_v33  ;;  %vm909_vm4 = vweird.f32 %v2178_v14  ;;  %v1144_v17 = vmul.f32 %v2180_v31, %v3162_v5  ;;  %vm3205_vm5 = vcmp.eq.f32.partialorder %v1152_v28, 8.507059e+37 }
 0x129   :  { %v2182_v34 = vpop.eup %2181  ;;  %v1621_v23 = vsel %vm3168_vm14, %v1620_v1, %v1616_v47  ;;  %2185 = vpow2.f32 %v507_v39  ;;  %v571_v26 = vmul.f32 1.442695, %v3202_v42  ;;  %v3213_v2 = vadd.f32 %v3151_v0, %v466_v32  ;;  %vm910_vm6 = vmor %vm908_vm0, %vm909_vm4 }
 0x12a   :  { %v1622_v51 = vmul.f32 2.0, %v1621_v23  ;;  %v906_v52 = vmul.f32 %v2178_v14, %v905_v37  ;;  %v1145_v53 = vsub.f32 1.0, %v1144_v17  ;;  %v675_v54 = vadd.f32 1.0, %v2182_v34 }
 0x12b   :  { %v2184_v6 = vpop.eup %2183  ;;  %vm1149_vm8 = vweird.f32 %v2180_v31  ;;  %v1394_v29 = vand.u32 2147483648, %v3177_v12  ;;  %2187 = vpow2.f32 %v539_v46  ;;  %v603_v58 = vmul.f32 1.442695, %v3213_v2 }
 0x12c   :  { %v1826_v38 = vsub.f32 1.0, %v1622_v51  ;;  %v907_v40 = vadd.f32 %v2178_v14, %v906_v52  ;;  %v1146_v49 = vmul.f32 %v2180_v31, %v1145_v53  ;;  %v1384_v4 = vmul.f32 %v2184_v6, %v3177_v12  ;;  %vm1150_vm7 = vmor %vm1148_vm1, %vm1149_vm8 }
 0x12d   :  { %v739_v8 = vmul.f32 %v675_v54, %v675_v54  ;;  %2189 = vpow2.f32 %v571_v26  ;;  %v3222_v9 = vadd.f32 %v3151_v0, %v325_v55  ;;  %v3225_v48 = vadd.f32 %v3151_v0, %v373_v56 }
 0x12e   :  { %v1890_v11 = vmul.f32 %v1826_v38, %v3035_v22  ;;  %v911_v57 = vsel %vm910_vm6, %v2178_v14, %v907_v40  ;;  %v1147_v10 = vadd.f32 %v2180_v31, %v1146_v49  ;;  %v1385_v60 = vsub.f32 1.0, %v1384_v4  ;;  %v421_v38 = vpop.f32.mrf.mxu2  ;;  %v469_v40 = vpop.f32.mrf.mxu3 }
 0x12f   :  { %v2186_v15 = vpop.eup %2185  ;;  %v916_v41 = vsel %vm3191_vm2, %v915_v36, %v911_v57  ;;  %vm1389_vm9 = vweird.f32 %v2184_v6  ;;  %v3233_v3 = vadd.f32 1.0, %v739_v8  ;;  %2191 = vpow2.f32 %v603_v58 }
 0x130   :  { %1954 = vst [vmem:[#allocation2 + $0x1a8] sm:$0xff] %v1890_v11  ;;  %v917_v16 = vmul.f32 2.0, %v916_v41  ;;  %v1151_v63 = vsel %vm1150_vm7, %v2180_v31, %v1147_v10  ;;  %v1386_v43 = vmul.f32 %v2184_v6, %v1385_v60  ;;  %v628_v22 = vadd.f32 1.0, %v2186_v15 }
 0x131   :  { %v2188_v19 = vpop.eup %2187  ;;  %v1156_v61 = vsel %vm3205_vm5, %v1155_v44, %v1151_v63  ;;  %vm1388_vm10 = vweird.f32 %v3177_v12  ;;  %2193 = vrcp.f32 %v3233_v3  ;;  %v509_v27 = vmul.f32 1.442695, %v3222_v9 }
 0x132   :  { %v1779_v24 = vsub.f32 1.0, %v917_v16  ;;  %v1157_v5 = vmul.f32 2.0, %v1156_v61  ;;  %v1387_v13 = vadd.f32 %v2184_v6, %v1386_v43  ;;  %vm1390_vm11 = vmor %vm1388_vm10, %vm1389_vm9  ;;  %vm1393_vm12 = vcmp.eq.f32.partialorder %v1392_v45, 8.507059e+37 }
 0x133   :  { %v2190_v28 = vpop.eup %2189  ;;  %v1395_v21 = vor.u32 1.1754944e-38, %v1394_v29  ;;  %v692_v14 = vmul.f32 %v628_v22, %v628_v22  ;;  %v644_v1 = vadd.f32 1.0, %v2188_v19  ;;  %v541_v12 = vmul.f32 1.442695, %v3225_v48 }
 0x134   :  { %v1843_v7 = vmul.f32 %v1779_v24, %v3038_v35  ;;  %v1795_v33 = vsub.f32 1.0, %v1157_v5  ;;  %v1391_v20 = vsel %vm1390_vm11, %v2184_v6, %v1387_v13  ;;  %v660_v44 = vadd.f32 1.0, %v2190_v28 }
 0x135   :  { %v2192_v36 = vpop.eup %2191  ;;  %v1396_v39 = vsel %vm1393_vm12, %v1395_v21, %v1391_v20  ;;  %v3243_v32 = vadd.f32 1.0, %v692_v14  ;;  %v708_v31 = vmul.f32 %v644_v1, %v644_v1  ;;  %2195 = vpow2.f32 %v509_v27 }
 0x136   :  { %1907 = vst [vmem:[#allocation2 + $0x30] sm:$0xff] %v1843_v7  ;;  %v1859_v46 = vmul.f32 %v1795_v33, %v3044_v50  ;;  %v1397_v47 = vmul.f32 2.0, %v1396_v39  ;;  %v676_v45 = vadd.f32 1.0, %v2192_v36  ;;  %v1632_v17 = vand.u32 2147483647, %v3233_v3 }
 0x137   :  { %v2194_v37 = vpop.eup %2193  ;;  %2197 = vrcp.f32 %v3243_v32  ;;  %v1634_v34 = vand.u32 2147483648, %v3233_v3  ;;  %v3250_v23 = vadd.f32 1.0, %v708_v31  ;;  %v927_v26 = vand.u32 2147483647, %v3243_v32 }
 0x138   :  { %1923 = vst [vmem:[#allocation2 + $0xb0] sm:$0xff] %v1859_v46  ;;  %v1811_v35 = vsub.f32 1.0, %v1397_v47  ;;  %v1624_v59 = vmul.f32 %v2194_v37, %v3233_v3  ;;  %v724_v51 = vmul.f32 %v660_v44, %v660_v44  ;;  %v740_v50 = vmul.f32 %v676_v45, %v676_v45  ;;  %v472_v46 = vpop.f32.mrf.mxu3 }
 0x139   :  { %2199 = vpow2.f32 %v541_v12  ;;  %v929_v54 = vand.u32 2147483648, %v3243_v32  ;;  %vm1628_vm13 = vweird.f32 %v3233_v3  ;;  %vm1629_vm14 = vweird.f32 %v2194_v37 }
 0x13a   :  { %v1875_v52 = vmul.f32 %v1811_v35, %v3049_v18  ;;  %v1625_v53 = vsub.f32 1.0, %v1624_v59  ;;  %2201 = vrcp.f32 %v3250_v23  ;;  %v3257_v55 = vadd.f32 1.0, %v724_v51  ;;  %vm1630_vm3 = vmor %vm1628_vm13, %vm1629_vm14 }
 0x13b   :  { %v3259_v56 = vadd.f32 1.0, %v740_v50  ;;  %v2196_v6 = vpop.eup %2195  ;;  %vm3261_vm15 = vcmp.eq.f32.partialorder %v1632_v17, 8.507059e+37  ;;  %v1169_v18 = vand.u32 2147483648, %v3250_v23  ;;  %v1635_v4 = vor.u32 1.1754944e-38, %v1634_v34 }
 0x13c   :  { %1939 = vst [vmem:[#allocation2 + $0x130] sm:$0xff] %v1875_v52  ;;  %v1626_v29 = vmul.f32 %v2194_v37, %v1625_v53  ;;  %vm923_vm0 = vweird.f32 %v3243_v32  ;;  %v1167_v8 = vand.u32 2147483647, %v3250_v23  ;;  %2203 = vrcp.f32 %v3257_v55 }
 0x13d   :  { %v2198_v49 = vpop.eup %2197  ;;  %vm3270_vm1 = vcmp.eq.f32.partialorder %v927_v26, 8.507059e+37  ;;  %v930_v60 = vor.u32 1.1754944e-38, %v929_v54  ;;  %vm1163_vm2 = vweird.f32 %v3250_v23  ;;  %2205 = vrcp.f32 %v3259_v56 }
 0x13e   :  { %v1627_v11 = vadd.f32 %v2194_v37, %v1626_v29  ;;  %v919_v57 = vmul.f32 %v2198_v49, %v3243_v32  ;;  %v629_v41 = vadd.f32 1.0, %v2196_v6  ;;  %v3280_v16 = vadd.f32 %v3151_v0, %v421_v38 }
 0x13f   :  { %v2200_v15 = vpop.eup %2199  ;;  %v3283_v63 = vadd.f32 %v3151_v0, %v469_v40  ;;  %v1170_v61 = vor.u32 1.1754944e-38, %v1169_v18  ;;  %v1407_v24 = vand.u32 2147483647, %v3257_v55  ;;  %vm924_vm4 = vweird.f32 %v2198_v49 }
 0x140   :  { %v2202_v43 = vpop.eup %2201  ;;  %v1631_v22 = vsel %vm1630_vm3, %v2194_v37, %v1627_v11  ;;  %v920_v19 = vsub.f32 1.0, %v919_v57  ;;  %vm3289_vm5 = vcmp.eq.f32.partialorder %v1167_v8, 8.507059e+37  ;;  %v1409_v27 = vand.u32 2147483648, %v3257_v55  ;;  %vm925_vm10 = vmor %vm923_vm0, %vm924_vm4 }
 0x141   :  { %v1636_v5 = vsel %vm3261_vm15, %v1635_v4, %v1631_v22  ;;  %v1159_v3 = vmul.f32 %v2202_v43, %v3250_v23  ;;  %vm1403_vm8 = vweird.f32 %v3257_v55  ;;  %v1647_v14 = vand.u32 2147483647, %v3259_v56 }
 0x142   :  { %v1637_v28 = vmul.f32 2.0, %v1636_v5  ;;  %v921_v21 = vmul.f32 %v2198_v49, %v920_v19  ;;  %v1649_v1 = vand.u32 2147483648, %v3259_v56  ;;  %v2204_v7 = vpop.eup %2203  ;;  %v693_v20 = vmul.f32 %v629_v41, %v629_v41  ;;  %v376_v5 = vpop.f32.mrf.mxu1 }
 0x143   :  { %v1160_v33 = vsub.f32 1.0, %v1159_v3  ;;  %v645_v12 = vadd.f32 1.0, %v2200_v15  ;;  %v573_v36 = vmul.f32 1.442695, %v3280_v16  ;;  %vm1164_vm6 = vweird.f32 %v2202_v43  ;;  %v2206_v47 = vpop.eup %2205  ;;  %v328_v15 = vpop.f32.mrf.mxu0 }
 0x144   :  { %v1827_v39 = vsub.f32 1.0, %v1637_v28  ;;  %v922_v31 = vadd.f32 %v2198_v49, %v921_v21  ;;  %v1399_v44 = vmul.f32 %v2204_v7, %v3257_v55  ;;  %vm3299_vm7 = vcmp.eq.f32.partialorder %v1407_v24, 8.507059e+37  ;;  %vm1165_vm12 = vmor %vm1163_vm2, %vm1164_vm6  ;;  %v424_v3 = vpop.f32.mrf.mxu2 }
 0x145   :  { %vm1643_vm9 = vweird.f32 %v3259_v56  ;;  %v1161_v45 = vmul.f32 %v2202_v43, %v1160_v33  ;;  %v3307_v37 = vadd.f32 1.0, %v693_v20  ;;  %v709_v17 = vmul.f32 %v645_v12, %v645_v12 }
 0x146   :  { %2207 = vpow2.f32 %v573_v36  ;;  %v1891_v35 = vmul.f32 %v1827_v39, %v3154_v62  ;;  %v926_v59 = vsel %vm925_vm10, %v2198_v49, %v922_v31  ;;  %v1400_v34 = vsub.f32 1.0, %v1399_v44 }
 0x147   :  { %v1639_v26 = vmul.f32 %v2206_v47, %v3259_v56  ;;  %v931_v51 = vsel %vm3270_vm1, %v930_v60, %v926_v59  ;;  %v1162_v50 = vadd.f32 %v2202_v43, %v1161_v45  ;;  %vm1404_vm11 = vweird.f32 %v2204_v7 }
 0x148   :  { %2209 = vrcp.f32 %v3307_v37  ;;  %1955 = vst [vmem:[#allocation2 + $0x1b0] sm:$0xff] %v1891_v35  ;;  %v932_v32 = vmul.f32 2.0, %v931_v51  ;;  %v1401_v52 = vmul.f32 %v2204_v7, %v1400_v34  ;;  %vm1644_vm13 = vweird.f32 %v2206_v47  ;;  %vm1405_vm14 = vmor %vm1403_vm8, %vm1404_vm11 }
 0x149   :  { %v1640_v53 = vsub.f32 1.0, %v1639_v26  ;;  %v1166_v62 = vsel %vm1165_vm12, %v2202_v43, %v1162_v50  ;;  %v942_v54 = vand.u32 2147483647, %v3307_v37  ;;  %v944_v6 = vand.u32 2147483648, %v3307_v37  ;;  %vm1645_vm0 = vmor %vm1643_vm9, %vm1644_vm13 }
 0x14a   :  { %v3319_v29 = vadd.f32 1.0, %v709_v17  ;;  %v1780_v58 = vsub.f32 1.0, %v932_v32  ;;  %v1171_v18 = vsel %vm3289_vm5, %v1170_v61, %v1166_v62  ;;  %v1402_v38 = vadd.f32 %v2204_v7, %v1401_v52 }
 0x14b   :  { %v1641_v40 = vmul.f32 %v2206_v47, %v1640_v53  ;;  %v1172_v4 = vmul.f32 2.0, %v1171_v18  ;;  %v1410_v23 = vor.u32 1.1754944e-38, %v1409_v27  ;;  %vm3326_vm15 = vcmp.eq.f32.partialorder %v1647_v14, 8.507059e+37 }
 0x14c   :  { %v2208_v49 = vpop.eup %2207  ;;  %2211 = vrcp.f32 %v3319_v29  ;;  %v1844_v11 = vmul.f32 %v1780_v58, %v3180_v25  ;;  %v1406_v57 = vsel %vm1405_vm14, %v2204_v7, %v1402_v38  ;;  %v1650_v60 = vor.u32 1.1754944e-38, %v1649_v1 }
 0x14d   :  { %v1642_v10 = vadd.f32 %v2206_v47, %v1641_v40  ;;  %v1796_v43 = vsub.f32 1.0, %v1172_v4  ;;  %v1411_v22 = vsel %vm3299_vm7, %v1410_v23, %v1406_v57  ;;  %vm938_vm1 = vweird.f32 %v3307_v37  ;;  %v427_v23 = vpop.f32.mrf.mxu2 }
 0x14e   :  { %v2210_v41 = vpop.eup %2209  ;;  %v945_v55 = vor.u32 1.1754944e-38, %v944_v6  ;;  %1908 = vst [vmem:[#allocation2 + $0x38] sm:$0xff] %v1844_v11  ;;  %v1412_v19 = vmul.f32 2.0, %v1411_v22  ;;  %vm3339_vm2 = vcmp.eq.f32.partialorder %v942_v54, 8.507059e+37  ;;  %vm1178_vm3 = vweird.f32 %v3319_v29  ;;  %v379_v54 = vpop.f32.mrf.mxu1 }
 0x14f   :  { %v1646_v61 = vsel %vm1645_vm0, %v2206_v47, %v1642_v10  ;;  %v934_v25 = vmul.f32 %v2210_v41, %v3307_v37  ;;  %v1860_v13 = vmul.f32 %v1796_v43, %v3185_v30  ;;  %vm939_vm4 = vweird.f32 %v2210_v41 }
 0x150   :  { %v1651_v56 = vsel %vm3326_vm15, %v1650_v60, %v1646_v61  ;;  %v1182_v27 = vand.u32 2147483647, %v3319_v29  ;;  %v1812_v28 = vsub.f32 1.0, %v1412_v19  ;;  %v661_v1 = vadd.f32 1.0, %v2208_v49  ;;  %vm940_vm5 = vmor %vm938_vm1, %vm939_vm4 }
 0x151   :  { %v1652_v21 = vmul.f32 2.0, %v1651_v56  ;;  %v935_v14 = vsub.f32 1.0, %v934_v25  ;;  %1924 = vst [vmem:[#allocation2 + $0xb8] sm:$0xff] %v1860_v13  ;;  %v605_v33 = vmul.f32 1.442695, %v3283_v63  ;;  %v3350_v20 = vadd.f32 %v3151_v0, %v328_v15 }
 0x152   :  { %v2212_v7 = vpop.eup %2211  ;;  %v3353_v12 = vadd.f32 %v3151_v0, %v376_v5  ;;  %v3356_v30 = vadd.f32 %v3151_v0, %v424_v3  ;;  %v1876_v36 = vmul.f32 %v1812_v28, %v3202_v42  ;;  %v1184_v47 = vand.u32 2147483648, %v3319_v29 }
 0x153   :  { %v1828_v39 = vsub.f32 1.0, %v1652_v21  ;;  %v936_v31 = vmul.f32 %v2210_v41, %v935_v14  ;;  %v1174_v44 = vmul.f32 %v2212_v7, %v3319_v29  ;;  %v725_v45 = vmul.f32 %v661_v1, %v661_v1 }
 0x154   :  { %2213 = vpow2.f32 %v605_v33  ;;  %v511_v17 = vmul.f32 1.442695, %v3350_v20  ;;  %1940 = vst [vmem:[#allocation2 + $0x138] sm:$0xff] %v1876_v36  ;;  %v543_v26 = vmul.f32 1.442695, %v3353_v12  ;;  %v3371_v50 = vadd.f32 %v3151_v0, %v472_v46 }
 0x155   :  { %v1892_v35 = vmul.f32 %v1828_v39, %v3213_v2  ;;  %v937_v59 = vadd.f32 %v2210_v41, %v936_v31  ;;  %v1175_v34 = vsub.f32 1.0, %v1174_v44  ;;  %v3367_v42 = vadd.f32 1.0, %v725_v45  ;;  %v331_v2 = vpop.f32.mrf.mxu0  ;;  %v475_v39 = vpop.f32.mrf.mxu3 }
 0x156   :  { %2215 = vpow2.f32 %v511_v17  ;;  %v575_v51 = vmul.f32 1.442695, %v3356_v30  ;;  %vm1179_vm8 = vweird.f32 %v2212_v7  ;;  %v1185_v58 = vor.u32 1.1754944e-38, %v1184_v47 }
 0x157   :  { %1956 = vst [vmem:[#allocation2 + $0x1b8] sm:$0xff] %v1892_v35  ;;  %v941_v32 = vsel %vm940_vm5, %v2210_v41, %v937_v59  ;;  %v1176_v52 = vmul.f32 %v2212_v7, %v1175_v34  ;;  %2217 = vpow2.f32 %v543_v26  ;;  %vm1180_vm6 = vmor %vm1178_vm3, %vm1179_vm8  ;;  %v607_v18 = vmul.f32 1.442695, %v3371_v50 }
 0x158   :  { %v946_v53 = vsel %vm3339_vm2, %v945_v55, %v941_v32  ;;  %2219 = vrcp.f32 %v3367_v42  ;;  %v3380_v38 = vadd.f32 %v3151_v0, %v331_v2  ;;  %vm1183_vm7 = vcmp.eq.f32.partialorder %v1182_v27, 8.507059e+37 }
 0x159   :  { %v947_v37 = vmul.f32 2.0, %v946_v53  ;;  %v1177_v62 = vadd.f32 %v2212_v7, %v1176_v52  ;;  %2221 = vpow2.f32 %v575_v51  ;;  %v3383_v57 = vadd.f32 %v3151_v0, %v379_v54 }
 0x15a   :  { %v2214_v6 = vpop.eup %2213  ;;  %2223 = vpow2.f32 %v607_v18  ;;  %vm1418_vm9 = vweird.f32 %v3367_v42  ;;  %v513_v55 = vmul.f32 1.442695, %v3380_v38  ;;  %v3389_v19 = vadd.f32 %v3151_v0, %v427_v23 }
 0x15b   :  { %v1781_v40 = vsub.f32 1.0, %v947_v37  ;;  %v1181_v49 = vsel %vm1180_vm6, %v2212_v7, %v1177_v62  ;;  %v677_v4 = vadd.f32 1.0, %v2214_v6  ;;  %v1422_v5 = vand.u32 2147483647, %v3367_v42 }
 0x15c   :  { %v2216_v8 = vpop.eup %2215  ;;  %v1186_v11 = vsel %vm1183_vm7, %v1185_v58, %v1181_v49  ;;  %v1424_v3 = vand.u32 2147483648, %v3367_v42  ;;  %v545_v14 = vmul.f32 1.442695, %v3383_v57  ;;  %v577_v36 = vmul.f32 1.442695, %v3389_v19 }
 0x15d   :  { %v2218_v10 = vpop.eup %2217  ;;  %v1845_v29 = vmul.f32 %v1781_v40, %v3222_v9  ;;  %v1187_v60 = vmul.f32 2.0, %v1186_v11  ;;  %v741_v15 = vmul.f32 %v677_v4, %v677_v4  ;;  %v630_v41 = vadd.f32 1.0, %v2216_v8 }
 0x15e   :  { %v2220_v43 = vpop.eup %2219  ;;  %v646_v22 = vadd.f32 1.0, %v2218_v10  ;;  %vm3404_vm11 = vcmp.eq.f32.partialorder %v1422_v5, 8.507059e+37  ;;  %v1425_v35 = vor.u32 1.1754944e-38, %v1424_v3  ;;  %v3413_v59 = vadd.f32 %v3151_v0, %v475_v39 }
 0x15f   :  { %v2222_v61 = vpop.eup %2221  ;;  %1909 = vst [vmem:[#allocation2 + $0x40] sm:$0xff] %v1845_v29  ;;  %v1797_v25 = vsub.f32 1.0, %v1187_v60  ;;  %v1414_v24 = vmul.f32 %v2220_v43, %v3367_v42  ;;  %v3393_v9 = vadd.f32 1.0, %v741_v15  ;;  %v694_v13 = vmul.f32 %v630_v41, %v630_v41 }
 0x160   :  { %v710_v56 = vmul.f32 %v646_v22, %v646_v22  ;;  %v662_v27 = vadd.f32 1.0, %v2222_v61  ;;  %v2224_v1 = vpop.eup %2223  ;;  %vm1419_vm10 = vweird.f32 %v2220_v43 }
 0x161   :  { %v1861_v28 = vmul.f32 %v1797_v25, %v3225_v48  ;;  %v1415_v21 = vsub.f32 1.0, %v1414_v24  ;;  %2225 = vrcp.f32 %v3393_v9  ;;  %v3399_v7 = vadd.f32 1.0, %v694_v13  ;;  %vm1420_vm12 = vmor %vm1418_vm9, %vm1419_vm10 }
 0x162   :  { %v3401_v33 = vadd.f32 1.0, %v710_v56  ;;  %2227 = vpow2.f32 %v513_v55  ;;  %v726_v44 = vmul.f32 %v662_v27, %v662_v27  ;;  %v678_v46 = vadd.f32 1.0, %v2224_v1 }
 0x163   :  { %1925 = vst [vmem:[#allocation2 + $0xc0] sm:$0xff] %v1861_v28  ;;  %v1416_v31 = vmul.f32 %v2220_v43, %v1415_v21  ;;  %v1662_v47 = vand.u32 2147483647, %v3393_v9  ;;  %v1664_v45 = vand.u32 2147483648, %v3393_v9  ;;  %2229 = vrcp.f32 %v3399_v7 }
 0x164   :  { %2231 = vrcp.f32 %v3401_v33  ;;  %vm1658_vm13 = vweird.f32 %v3393_v9  ;;  %v959_v34 = vand.u32 2147483648, %v3399_v7  ;;  %v3419_v26 = vadd.f32 1.0, %v726_v44 }
 0x165   :  { %v1417_v17 = vadd.f32 %v2220_v43, %v1416_v31  ;;  %2233 = vpow2.f32 %v545_v14  ;;  %v957_v52 = vand.u32 2147483647, %v3399_v7  ;;  %v742_v2 = vmul.f32 %v678_v46, %v678_v46 }
 0x166   :  { %2235 = vpow2.f32 %v577_v36  ;;  %vm3425_vm14 = vcmp.eq.f32.partialorder %v1662_v47, 8.507059e+37  ;;  %v1665_v54 = vor.u32 1.1754944e-38, %v1664_v45  ;;  %v1197_v6 = vand.u32 2147483647, %v3401_v33 }
 0x167   :  { %v2226_v51 = vpop.eup %2225  ;;  %v1421_v32 = vsel %vm1420_vm12, %v2220_v43, %v1417_v17  ;;  %vm953_vm15 = vweird.f32 %v3399_v7  ;;  %vm1193_vm0 = vweird.f32 %v3401_v33  ;;  %2237 = vrcp.f32 %v3419_v26 }
 0x168   :  { %v2228_v53 = vpop.eup %2227  ;;  %v1426_v37 = vsel %vm3404_vm11, %v1425_v35, %v1421_v32  ;;  %v1654_v42 = vmul.f32 %v2226_v51, %v3393_v9  ;;  %v960_v49 = vor.u32 1.1754944e-38, %v959_v34  ;;  %v1199_v4 = vand.u32 2147483648, %v3401_v33 }
 0x169   :  { %v1427_v58 = vmul.f32 2.0, %v1426_v37  ;;  %v2230_v18 = vpop.eup %2229  ;;  %v3434_v23 = vadd.f32 1.0, %v742_v2  ;;  %vm1659_vm1 = vweird.f32 %v2226_v51  ;;  %vm3437_vm2 = vcmp.eq.f32.partialorder %v957_v52, 8.507059e+37 }
 0x16a   :  { %v1655_v40 = vsub.f32 1.0, %v1654_v42  ;;  %v2232_v8 = vpop.eup %2231  ;;  %v949_v10 = vmul.f32 %v2230_v18, %v3399_v7  ;;  %v631_v60 = vadd.f32 1.0, %v2228_v53  ;;  %vm3442_vm3 = vcmp.eq.f32.partialorder %v1197_v6, 8.507059e+37  ;;  %vm1660_vm5 = vmor %vm1658_vm13, %vm1659_vm1 }
 0x16b   :  { %v1813_v11 = vsub.f32 1.0, %v1427_v58  ;;  %v2234_v15 = vpop.eup %2233  ;;  %v1189_v43 = vmul.f32 %v2232_v8, %v3401_v33  ;;  %v1437_v55 = vand.u32 2147483647, %v3419_v26  ;;  %v1439_v5 = vand.u32 2147483648, %v3419_v26 }
 0x16c   :  { %v1656_v41 = vmul.f32 %v2226_v51, %v1655_v40  ;;  %v2236_v61 = vpop.eup %2235  ;;  %v950_v24 = vsub.f32 1.0, %v949_v10  ;;  %2239 = vrcp.f32 %v3434_v23  ;;  %v1200_v56 = vor.u32 1.1754944e-38, %v1199_v4 }
 0x16d   :  { %v1877_v25 = vmul.f32 %v1813_v11, %v3280_v16  ;;  %v1190_v13 = vsub.f32 1.0, %v1189_v43  ;;  %vm1433_vm4 = vweird.f32 %v3419_v26  ;;  %v2238_v27 = vpop.eup %2237  ;;  %vm954_vm8 = vweird.f32 %v2230_v18 }
 0x16e   :  { %v1657_v3 = vadd.f32 %v2226_v51, %v1656_v41  ;;  %v951_v28 = vmul.f32 %v2230_v18, %v950_v24  ;;  %v695_v21 = vmul.f32 %v631_v60, %v631_v60  ;;  %v647_v16 = vadd.f32 1.0, %v2234_v15  ;;  %vm955_vm9 = vmor %vm953_vm15, %vm954_vm8 }
 0x16f   :  { %1941 = vst [vmem:[#allocation2 + $0x140] sm:$0xff] %v1877_v25  ;;  %v1191_v1 = vmul.f32 %v2232_v8, %v1190_v13  ;;  %vm1194_vm6 = vweird.f32 %v2232_v8  ;;  %v1429_v36 = vmul.f32 %v2238_v27, %v3419_v26  ;;  %vm3457_vm7 = vcmp.eq.f32.partialorder %v1437_v55, 8.507059e+37  ;;  %v382_v26 = vpop.f32.mrf.mxu1 }
 0x170   :  { %v1661_v14 = vsel %vm1660_vm5, %v2226_v51, %v1657_v3  ;;  %v952_v31 = vadd.f32 %v2230_v18, %v951_v28  ;;  %v1440_v46 = vor.u32 1.1754944e-38, %v1439_v5  ;;  %v3463_v45 = vadd.f32 1.0, %v695_v21  ;;  %vm1195_vm10 = vmor %vm1193_vm0, %vm1194_vm6 }
 0x171   :  { %v1666_v39 = vsel %vm3425_vm14, %v1665_v54, %v1661_v14  ;;  %v1192_v48 = vadd.f32 %v2232_v8, %v1191_v1  ;;  %v1430_v47 = vsub.f32 1.0, %v1429_v36  ;;  %vm1434_vm11 = vweird.f32 %v2238_v27 }
 0x172   :  { %v1667_v9 = vmul.f32 2.0, %v1666_v39  ;;  %v2240_v17 = vpop.eup %2239  ;;  %v956_v35 = vsel %vm955_vm9, %v2230_v18, %v952_v31  ;;  %vm1673_vm12 = vweird.f32 %v3434_v23  ;;  %v711_v34 = vmul.f32 %v647_v16, %v647_v16  ;;  %vm1435_vm13 = vmor %vm1433_vm4, %vm1434_vm11  ;;  %v430_v39 = vpop.f32.mrf.mxu2 }
 0x173   :  { %v961_v32 = vsel %vm3437_vm2, %v960_v49, %v956_v35  ;;  %v1196_v52 = vsel %vm1195_vm10, %v2232_v8, %v1192_v48  ;;  %v1431_v7 = vmul.f32 %v2238_v27, %v1430_v47  ;;  %v1669_v37 = vmul.f32 %v2240_v17, %v3434_v23  ;;  %v334_v49 = vpop.f32.mrf.mxu0  ;;  %v478_v47 = vpop.f32.mrf.mxu3 }
 0x174   :  { %v1829_v51 = vsub.f32 1.0, %v1667_v9  ;;  %v962_v2 = vmul.f32 2.0, %v961_v32  ;;  %v1201_v53 = vsel %vm3442_vm3, %v1200_v56, %v1196_v52  ;;  %v1677_v42 = vand.u32 2147483647, %v3434_v23 }
 0x175   :  { %v1202_v62 = vmul.f32 2.0, %v1201_v53  ;;  %v1432_v54 = vadd.f32 %v2238_v27, %v1431_v7  ;;  %2241 = vrcp.f32 %v3463_v45  ;;  %v1670_v58 = vsub.f32 1.0, %v1669_v37 }
 0x176   :  { %v1893_v33 = vmul.f32 %v1829_v51, %v3283_v63  ;;  %v1782_v6 = vsub.f32 1.0, %v962_v2  ;;  %v1679_v18 = vand.u32 2147483648, %v3434_v23  ;;  %v663_v40 = vadd.f32 1.0, %v2236_v61 }
 0x177   :  { %v1798_v4 = vsub.f32 1.0, %v1202_v62  ;;  %v1436_v8 = vsel %vm1435_vm13, %v2238_v27, %v1432_v54  ;;  %v3480_v11 = vadd.f32 1.0, %v711_v34  ;;  %v609_v63 = vmul.f32 1.442695, %v3413_v59  ;;  %v385_v37 = vpop.f32.mrf.mxu1 }
 0x178   :  { %1957 = vst [vmem:[#allocation2 + $0x1c0] sm:$0xff] %v1893_v33  ;;  %v1846_v10 = vmul.f32 %v1782_v6, %v3350_v20  ;;  %v1441_v29 = vsel %vm3457_vm7, %v1440_v46, %v1436_v8  ;;  %v1671_v60 = vmul.f32 %v2240_v17, %v1670_v58  ;;  %vm1674_vm14 = vweird.f32 %v2240_v17  ;;  %v3533_v33 = vld [vmem:[%s3886_s2] ss:$0 sm:$0xff]  ;;  %s2359_s2 = smov [#allocation2]  }
 0x179   :  { %v1862_v15 = vmul.f32 %v1798_v4, %v3353_v12  ;;  %v1442_v41 = vmul.f32 2.0, %v1441_v29  ;;  %vm3487_vm15 = vcmp.eq.f32.partialorder %v1677_v42, 8.507059e+37  ;;  %2243 = vrcp.f32 %v3480_v11  ;;  %vm1675_vm0 = vmor %vm1673_vm12, %vm1674_vm14  ;;  %s1969_s21 = sshll.u32 %s2359_s2, 4  ;;  %s1970_s21 = int_to_ptr.vmem [resolvable:$true] %s1969_s21 }
 0x17a   :  { %1910 = vst [vmem:[#allocation2 + $0x48] sm:$0xff] %v1846_v10  ;;  %v1672_v22 = vadd.f32 %v2240_v17, %v1671_v60  ;;  %v1680_v55 = vor.u32 1.1754944e-38, %v1679_v18  ;;  %v972_v20 = vand.u32 2147483647, %v3463_v45  ;;  %v974_v61 = vand.u32 2147483648, %v3463_v45 }
 0x17b   :  { %v2242_v25 = vpop.eup %2241  ;;  %1926 = vst [vmem:[#allocation2 + $0xc8] sm:$0xff] %v1862_v15  ;;  %v1814_v24 = vsub.f32 1.0, %v1442_v41  ;;  %v727_v12 = vmul.f32 %v663_v40, %v663_v40  ;;  %2245 = vpow2.f32 %v609_v63  ;;  %v3497_v5 = vadd.f32 %v3151_v0, %v334_v49 }
 0x17c   :  { %v1676_v3 = vsel %vm1675_vm0, %v2240_v17, %v1672_v22  ;;  %v964_v13 = vmul.f32 %v2242_v25, %v3463_v45  ;;  %vm968_vm1 = vweird.f32 %v3463_v45  ;;  %v1212_v56 = vand.u32 2147483647, %v3480_v11  ;;  %v337_v17 = vpop.f32.mrf.mxu0 }
 0x17d   :  { %v1878_v27 = vmul.f32 %v1814_v24, %v3356_v30  ;;  %v1681_v28 = vsel %vm3487_vm15, %v1680_v55, %v1676_v3  ;;  %v1214_v23 = vand.u32 2147483648, %v3480_v11  ;;  %v3506_v21 = vadd.f32 1.0, %v727_v12 }
 0x17e   :  { %v1682_v16 = vmul.f32 2.0, %v1681_v28  ;;  %v965_v14 = vsub.f32 1.0, %v964_v13  ;;  %v515_v1 = vmul.f32 1.442695, %v3497_v5  ;;  %v3510_v36 = vadd.f32 %v3151_v0, %v382_v26 }
 0x17f   :  { %v2244_v31 = vpop.eup %2243  ;;  %1942 = vst [vmem:[#allocation2 + $0x148] sm:$0xff] %v1878_v27  ;;  %vm3512_vm2 = vcmp.eq.f32.partialorder %v972_v20, 8.507059e+37  ;;  %v975_v30 = vor.u32 1.1754944e-38, %v974_v61  ;;  %vm1208_vm3 = vweird.f32 %v3480_v11  ;;  %2247 = vrcp.f32 %v3506_v21  ;;  %v433_v20 = vpop.f32.mrf.mxu2 }
 0x180   :  { %v1830_v46 = vsub.f32 1.0, %v1682_v16  ;;  %v966_v9 = vmul.f32 %v2242_v25, %v965_v14  ;;  %vm969_vm4 = vweird.f32 %v2242_v25  ;;  %v1204_v48 = vmul.f32 %v2244_v31, %v3480_v11 }
 0x181   :  { %v2246_v35 = vpop.eup %2245  ;;  %vm3519_vm5 = vcmp.eq.f32.partialorder %v1212_v56, 8.507059e+37  ;;  %v1215_v51 = vor.u32 1.1754944e-38, %v1214_v23  ;;  %2249 = vpow2.f32 %v515_v1  ;;  %v547_v32 = vmul.f32 1.442695, %v3510_v36  ;;  %vm970_vm8 = vmor %vm968_vm1, %vm969_vm4 }
 0x182   :  { %v1894_v52 = vmul.f32 %v1830_v46, %v3371_v50  ;;  %v967_v7 = vadd.f32 %v2242_v25, %v966_v9  ;;  %v1205_v2 = vsub.f32 1.0, %v1204_v48  ;;  %v679_v53 = vadd.f32 1.0, %v2246_v35  ;;  %v481_v35 = vpop.f32.mrf.mxu3 }
 0x183   :  { %2251 = vpow2.f32 %v547_v32  ;;  %v3528_v42 = vadd.f32 %v3151_v0, %v430_v39  ;;  %v3536_v62 = vadd.f32 %v3533_v33, %v478_v47  ;;  %v3539_v50 = vadd.f32 %v3533_v33, %v337_v17 }
 0x184   :  { %1958 = vst [vmem:[#allocation2 + $0x1c8] sm:$0xff] %v1894_v52  ;;  %v971_v54 = vsel %vm970_vm8, %v2242_v25, %v967_v7  ;;  %v1206_v6 = vmul.f32 %v2244_v31, %v1205_v2  ;;  %vm1209_vm6 = vweird.f32 %v2244_v31  ;;  %vm1448_vm7 = vweird.f32 %v3506_v21 }
 0x185   :  { %v743_v45 = vmul.f32 %v679_v53, %v679_v53  ;;  %v2248_v0 = vpop.eup %2247  ;;  %v976_v58 = vsel %vm3512_vm2, %v975_v30, %v971_v54  ;;  %v1454_v18 = vand.u32 2147483648, %v3506_v21  ;;  %v579_v40 = vmul.f32 1.442695, %v3528_v42  ;;  %vm1210_vm9 = vmor %vm1208_vm3, %vm1209_vm6 }
 0x186   :  { %v3547_v49 = vadd.f32 %v3533_v33, %v385_v37  ;;  %v977_v4 = vmul.f32 2.0, %v976_v58  ;;  %v1207_v8 = vadd.f32 %v2244_v31, %v1206_v6  ;;  %v1444_v63 = vmul.f32 %v2248_v0, %v3506_v21 }
 0x187   :  { %v1452_v10 = vand.u32 2147483647, %v3506_v21  ;;  %v2250_v29 = vpop.eup %2249  ;;  %v3553_v60 = vadd.f32 1.0, %v743_v45  ;;  %2253 = vpow2.f32 %v579_v40  ;;  %v611_v26 = vmul.f32 1.442695, %v3536_v62 }
 0x188   :  { %v517_v15 = vmul.f32 1.442695, %v3539_v50  ;;  %v1783_v41 = vsub.f32 1.0, %v977_v4  ;;  %v1211_v43 = vsel %vm1210_vm9, %v2244_v31, %v1207_v8  ;;  %v1445_v22 = vsub.f32 1.0, %v1444_v63 }
 0x189   :  { %v632_v55 = vadd.f32 1.0, %v2250_v29  ;;  %v2252_v61 = vpop.eup %2251  ;;  %v1216_v25 = vsel %vm3519_vm5, %v1215_v51, %v1211_v43  ;;  %v1455_v24 = vor.u32 1.1754944e-38, %v1454_v18  ;;  %2255 = vrcp.f32 %v3553_v60 }
 0x18a   :  { %v549_v11 = vmul.f32 1.442695, %v3547_v49  ;;  %v1847_v12 = vmul.f32 %v1783_v41, %v3380_v38  ;;  %v1217_v3 = vmul.f32 2.0, %v1216_v25  ;;  %v1446_v13 = vmul.f32 %v2248_v0, %v1445_v22 }
 0x18b   :  { %vm1449_vm10 = vweird.f32 %v2248_v0  ;;  %v696_v56 = vmul.f32 %v632_v55, %v632_v55  ;;  %v648_v27 = vadd.f32 1.0, %v2252_v61  ;;  %2257 = vpow2.f32 %v611_v26 }
 0x18c   :  { %v3563_v28 = vadd.f32 %v3533_v33, %v433_v20  ;;  %1911 = vst [vmem:[#allocation2 + $0x50] sm:$0xff] %v1847_v12  ;;  %v1799_v23 = vsub.f32 1.0, %v1217_v3  ;;  %v1447_v16 = vadd.f32 %v2248_v0, %v1446_v13  ;;  %v1692_v14 = vand.u32 2147483647, %v3553_v60  ;;  %vm1450_vm11 = vmor %vm1448_vm7, %vm1449_vm10 }
 0x18d   :  { %2259 = vpow2.f32 %v517_v15  ;;  %v2254_v1 = vpop.eup %2253  ;;  %v1694_v38 = vand.u32 2147483648, %v3553_v60  ;;  %v3569_v39 = vadd.f32 1.0, %v696_v56  ;;  %v712_v31 = vmul.f32 %v648_v27, %v648_v27  ;;  %v436_v27 = vpop.f32.mrf.mxu2 }
 0x18e   :  { %2261 = vpow2.f32 %v549_v11  ;;  %v1863_v44 = vmul.f32 %v1799_v23, %v3383_v57  ;;  %v1451_v30 = vsel %vm1450_vm11, %v2248_v0, %v1447_v16  ;;  %vm1453_vm12 = vcmp.eq.f32.partialorder %v1452_v10, 8.507059e+37 }
 0x18f   :  { %v664_v46 = vadd.f32 1.0, %v2254_v1  ;;  %v2256_v9 = vpop.eup %2255  ;;  %v1456_v48 = vsel %vm1453_vm12, %v1455_v24, %v1451_v30  ;;  %2263 = vrcp.f32 %v3569_v39  ;;  %vm1688_vm13 = vweird.f32 %v3553_v60 }
 0x190   :  { %1927 = vst [vmem:[#allocation2 + $0xd0] sm:$0xff] %v1863_v44  ;;  %v1457_v47 = vmul.f32 2.0, %v1456_v48  ;;  %v1684_v21 = vmul.f32 %v2256_v9, %v3553_v60  ;;  %vm3575_vm14 = vcmp.eq.f32.partialorder %v1692_v14, 8.507059e+37  ;;  %v1695_v57 = vor.u32 1.1754944e-38, %v1694_v38 }
 0x191   :  { %v2258_v34 = vpop.eup %2257  ;;  %v3579_v51 = vadd.f32 1.0, %v712_v31  ;;  %v728_v32 = vmul.f32 %v664_v46, %v664_v46  ;;  %v581_v52 = vmul.f32 1.442695, %v3563_v28  ;;  %v987_v37 = vand.u32 2147483647, %v3569_v39 }
 0x192   :  { %v1815_v2 = vsub.f32 1.0, %v1457_v47  ;;  %v1685_v53 = vsub.f32 1.0, %v1684_v21  ;;  %v680_v54 = vadd.f32 1.0, %v2258_v34  ;;  %vm1689_vm15 = vweird.f32 %v2256_v9 }
 0x193   :  { %v2260_v7 = vpop.eup %2259  ;;  %v989_v45 = vand.u32 2147483648, %v3569_v39  ;;  %2265 = vrcp.f32 %v3579_v51  ;;  %v3586_v0 = vadd.f32 %v3533_v33, %v481_v35  ;;  %v3589_v40 = vadd.f32 1.0, %v728_v32  ;;  %vm1690_vm2 = vmor %vm1688_vm13, %vm1689_vm15 }
 0x194   :  { %v2262_v6 = vpop.eup %2261  ;;  %v1879_v58 = vmul.f32 %v1815_v2, %v3389_v19  ;;  %v1686_v18 = vmul.f32 %v2256_v9, %v1685_v53  ;;  %v744_v4 = vmul.f32 %v680_v54, %v680_v54  ;;  %vm983_vm0 = vweird.f32 %v3569_v39 }
 0x195   :  { %v2264_v8 = vpop.eup %2263  ;;  %v633_v63 = vadd.f32 1.0, %v2260_v7  ;;  %v649_v10 = vadd.f32 1.0, %v2262_v6  ;;  %2267 = vpow2.f32 %v581_v52  ;;  %vm3593_vm1 = vcmp.eq.f32.partialorder %v987_v37, 8.507059e+37 }
 0x196   :  { %1943 = vst [vmem:[#allocation2 + $0x150] sm:$0xff] %v1879_v58  ;;  %v1687_v29 = vadd.f32 %v2256_v9, %v1686_v18  ;;  %v979_v26 = vmul.f32 %v2264_v8, %v3569_v39  ;;  %v1227_v19 = vand.u32 2147483647, %v3579_v51  ;;  %2269 = vrcp.f32 %v3589_v40 }
 0x197   :  { %v990_v41 = vor.u32 1.1754944e-38, %v989_v45  ;;  %v1229_v43 = vand.u32 2147483648, %v3579_v51  ;;  %v1469_v22 = vand.u32 2147483648, %v3589_v40  ;;  %v3604_v55 = vadd.f32 1.0, %v744_v4 }
 0x198   :  { %v1691_v20 = vsel %vm1690_vm2, %v2256_v9, %v1687_v29  ;;  %v980_v61 = vsub.f32 1.0, %v979_v26  ;;  %vm1223_vm3 = vweird.f32 %v3579_v51  ;;  %v697_v25 = vmul.f32 %v633_v63, %v633_v63 }
 0x199   :  { %v2266_v24 = vpop.eup %2265  ;;  %v1696_v11 = vsel %vm3575_vm14, %v1695_v57, %v1691_v20  ;;  %v1467_v12 = vand.u32 2147483647, %v3589_v40  ;;  %2271 = vrcp.f32 %v3604_v55  ;;  %v713_v60 = vmul.f32 %v649_v10, %v649_v10 }
 0x19a   :  { %v1697_v3 = vmul.f32 2.0, %v1696_v11  ;;  %v981_v13 = vmul.f32 %v2264_v8, %v980_v61  ;;  %vm984_vm4 = vweird.f32 %v2264_v8  ;;  %v1219_v56 = vmul.f32 %v2266_v24, %v3579_v51 }
 0x19b   :  { %vm3612_vm5 = vcmp.eq.f32.partialorder %v1227_v19, 8.507059e+37  ;;  %v3616_v23 = vpop.eup %2267  ;;  %v1230_v16 = vor.u32 1.1754944e-38, %v1229_v43  ;;  %vm1463_vm8 = vweird.f32 %v3589_v40  ;;  %v1470_v14 = vor.u32 1.1754944e-38, %v1469_v22  ;;  %vm985_vm6 = vmor %vm983_vm0, %vm984_vm4 }
 0x19c   :  { %v3619_v1 = vadd.f32 1.0, %v697_v25  ;;  %v2270_v38 = vpop.eup %2269  ;;  %v1831_v31 = vsub.f32 1.0, %v1697_v3  ;;  %v982_v44 = vadd.f32 %v2264_v8, %v981_v13  ;;  %v1220_v30 = vsub.f32 1.0, %v1219_v56  ;;  %v388_v56 = vpop.f32.mrf.mxu1 }
 0x19d   :  { %v1707_v46 = vand.u32 2147483647, %v3604_v55  ;;  %vm1224_vm7 = vweird.f32 %v2266_v24  ;;  %v1459_v9 = vmul.f32 %v2270_v38, %v3589_v40  ;;  %vm3625_vm9 = vcmp.eq.f32.partialorder %v1467_v12, 8.507059e+37  ;;  %v340_v40 = vpop.f32.mrf.mxu0 }
 0x19e   :  { %v1709_v47 = vand.u32 2147483648, %v3604_v55  ;;  %v3630_v21 = vadd.f32 1.0, %v713_v60  ;;  %v1895_v17 = vmul.f32 %v1831_v31, %v3413_v59  ;;  %v986_v35 = vsel %vm985_vm6, %v2264_v8, %v982_v44  ;;  %vm1225_vm13 = vmor %vm1223_vm3, %vm1224_vm7 }
 0x19f   :  { %v1221_v34 = vmul.f32 %v2266_v24, %v1220_v30  ;;  %2273 = vrcp.f32 %v3619_v1  ;;  %v2272_v57 = vpop.eup %2271  ;;  %v991_v39 = vsel %vm3593_vm1, %v990_v41, %v986_v35  ;;  %v1460_v32 = vsub.f32 1.0, %v1459_v9 }
 0x1a0   :  { %vm1464_vm10 = vweird.f32 %v2270_v38  ;;  %vm1703_vm11 = vweird.f32 %v3604_v55  ;;  %1959 = vst [vmem:[#allocation2 + $0x1d0] sm:$0xff] %v1895_v17  ;;  %v992_v52 = vmul.f32 2.0, %v991_v39  ;;  %v1699_v2 = vmul.f32 %v2272_v57, %v3604_v55 }
 0x1a1   :  { %v1222_v7 = vadd.f32 %v2266_v24, %v1221_v34  ;;  %vm3638_vm12 = vcmp.eq.f32.partialorder %v1707_v46, 8.507059e+37  ;;  %v1461_v59 = vmul.f32 %v2270_v38, %v1460_v32  ;;  %v1710_v37 = vor.u32 1.1754944e-38, %v1709_v47  ;;  %vm1465_vm0 = vmor %vm1463_vm8, %vm1464_vm10 }
 0x1a2   :  { %v1004_v54 = vand.u32 2147483648, %v3619_v1  ;;  %2275 = vrcp.f32 %v3630_v21  ;;  %v1784_v6 = vsub.f32 1.0, %v992_v52  ;;  %v1700_v58 = vsub.f32 1.0, %v1699_v2 }
 0x1a3   :  { %v1226_v45 = vsel %vm1225_vm13, %v2266_v24, %v1222_v7  ;;  %vm998_vm14 = vweird.f32 %v3619_v1  ;;  %v1462_v4 = vadd.f32 %v2270_v38, %v1461_v59  ;;  %vm1704_vm15 = vweird.f32 %v2272_v57 }
 0x1a4   :  { %v1231_v18 = vsel %vm3612_vm5, %v1230_v16, %v1226_v45  ;;  %v1002_v8 = vand.u32 2147483647, %v3619_v1  ;;  %v1848_v63 = vmul.f32 %v1784_v6, %v3497_v5  ;;  %v1701_v29 = vmul.f32 %v2272_v57, %v1700_v58  ;;  %vm1705_vm3 = vmor %vm1703_vm11, %vm1704_vm15 }
 0x1a5   :  { %v2274_v51 = vpop.eup %2273  ;;  %v1232_v10 = vmul.f32 2.0, %v1231_v18  ;;  %v1005_v26 = vor.u32 1.1754944e-38, %v1004_v54  ;;  %vm1238_vm1 = vweird.f32 %v3630_v21  ;;  %v1466_v15 = vsel %vm1465_vm0, %v2270_v38, %v1462_v4  ;;  %v391_v18 = vpop.f32.mrf.mxu1 }
 0x1a6   :  { %v994_v19 = vmul.f32 %v2274_v51, %v3619_v1  ;;  %v1242_v41 = vand.u32 2147483647, %v3630_v21  ;;  %v1244_v43 = vand.u32 2147483648, %v3630_v21  ;;  %1912 = vst [vmem:[#allocation2 + $0x58] sm:$0xff] %v1848_v63  ;;  %v1471_v5 = vsel %vm3625_vm9, %v1470_v14, %v1466_v15  ;;  %v439_v4 = vpop.f32.mrf.mxu2 }
 0x1a7   :  { %v1800_v22 = vsub.f32 1.0, %v1232_v10  ;;  %v1702_v20 = vadd.f32 %v2272_v57, %v1701_v29  ;;  %vm999_vm2 = vweird.f32 %v2274_v51  ;;  %v1472_v25 = vmul.f32 2.0, %v1471_v5 }
 0x1a8   :  { %v2276_v61 = vpop.eup %2275  ;;  %v995_v24 = vsub.f32 1.0, %v994_v19  ;;  %v665_v11 = vadd.f32 1.0, %v3616_v23  ;;  %v613_v12 = vmul.f32 1.442695, %v3586_v0  ;;  %v3671_v23 = vadd.f32 %v3533_v33, %v340_v40  ;;  %vm1000_vm5 = vmor %vm998_vm14, %vm999_vm2 }
 0x1a9   :  { %v1864_v60 = vmul.f32 %v1800_v22, %v3510_v36  ;;  %v1706_v3 = vsel %vm1705_vm3, %v2272_v57, %v1702_v20  ;;  %v1234_v13 = vmul.f32 %v2276_v61, %v3630_v21  ;;  %vm1239_vm4 = vweird.f32 %v2276_v61 }
 0x1aa   :  { %v1816_v16 = vsub.f32 1.0, %v1472_v25  ;;  %v1711_v14 = vsel %vm3638_vm12, %v1710_v37, %v1706_v3  ;;  %v996_v38 = vmul.f32 %v2274_v51, %v995_v24  ;;  %v729_v55 = vmul.f32 %v665_v11, %v665_v11  ;;  %vm1240_vm6 = vmor %vm1238_vm1, %vm1239_vm4 }
 0x1ab   :  { %1928 = vst [vmem:[#allocation2 + $0xd8] sm:$0xff] %v1864_v60  ;;  %v1712_v31 = vmul.f32 2.0, %v1711_v14  ;;  %v1235_v44 = vsub.f32 1.0, %v1234_v13  ;;  %2277 = vpow2.f32 %v613_v12  ;;  %v3677_v9 = vadd.f32 %v3533_v33, %v388_v56 }
 0x1ac   :  { %v1880_v36 = vmul.f32 %v1816_v16, %v3528_v42  ;;  %v997_v30 = vadd.f32 %v2274_v51, %v996_v38  ;;  %v3674_v46 = vadd.f32 1.0, %v729_v55  ;;  %v519_v17 = vmul.f32 1.442695, %v3671_v23  ;;  %v484_v42 = vpop.f32.mrf.mxu3 }
 0x1ad   :  { %v1832_v48 = vsub.f32 1.0, %v1712_v31  ;;  %v1236_v47 = vmul.f32 %v2276_v61, %v1235_v44  ;;  %v3684_v35 = vadd.f32 %v3533_v33, %v436_v27  ;;  %vm1003_vm8 = vcmp.eq.f32.partialorder %v1002_v8, 8.507059e+37 }
 0x1ae   :  { %1944 = vst [vmem:[#allocation2 + $0x158] sm:$0xff] %v1880_v36  ;;  %v1001_v34 = vsel %vm1000_vm5, %v2274_v51, %v997_v30  ;;  %2279 = vrcp.f32 %v3674_v46  ;;  %v1245_v1 = vor.u32 1.1754944e-38, %v1244_v43  ;;  %v551_v7 = vmul.f32 1.442695, %v3677_v9 }
 0x1af   :  { %v1896_v57 = vmul.f32 %v1832_v48, %v3536_v62  ;;  %v1006_v39 = vsel %vm1003_vm8, %v1005_v26, %v1001_v34  ;;  %v1237_v32 = vadd.f32 %v2276_v61, %v1236_v47  ;;  %2281 = vpow2.f32 %v519_v17  ;;  %v343_v62 = vpop.f32.mrf.mxu0 }
 0x1b0   :  { %v1007_v52 = vmul.f32 2.0, %v1006_v39  ;;  %vm1243_vm7 = vcmp.eq.f32.partialorder %v1242_v41, 8.507059e+37  ;;  %v583_v59 = vmul.f32 1.442695, %v3684_v35  ;;  %v3694_v37 = vadd.f32 %v3533_v33, %v484_v42 }
 0x1b1   :  { %v2278_v2 = vpop.eup %2277  ;;  %1960 = vst [vmem:[#allocation2 + $0x1d8] sm:$0xff] %v1896_v57  ;;  %v1241_v53 = vsel %vm1240_vm6, %v2276_v61, %v1237_v32  ;;  %2283 = vpow2.f32 %v551_v7  ;;  %v3699_v10 = vadd.f32 %v3533_v33, %v343_v62  ;;  %v1482_v15 = vand.u32 2147483647, %v3674_v46 }
 0x1b2   :  { %v1785_v54 = vsub.f32 1.0, %v1007_v52  ;;  %v1246_v6 = vsel %vm1243_vm7, %v1245_v1, %v1241_v53  ;;  %v681_v45 = vadd.f32 1.0, %v2278_v2  ;;  %2285 = vpow2.f32 %v583_v59 }
 0x1b3   :  { %v1247_v21 = vmul.f32 2.0, %v1246_v6  ;;  %v615_v58 = vmul.f32 1.442695, %v3694_v37  ;;  %v3706_v43 = vadd.f32 %v3533_v33, %v391_v18  ;;  %v3709_v22 = vadd.f32 %v3533_v33, %v439_v4 }
 0x1b4   :  { %v2280_v8 = vpop.eup %2279  ;;  %v1849_v51 = vmul.f32 %v1785_v54, %v3539_v50  ;;  %v745_v63 = vmul.f32 %v681_v45, %v681_v45  ;;  %vm1478_vm9 = vweird.f32 %v3674_v46  ;;  %v1484_v61 = vand.u32 2147483648, %v3674_v46  ;;  %v487_v27 = vpop.f32.mrf.mxu3 }
 0x1b5   :  { %v1801_v29 = vsub.f32 1.0, %v1247_v21  ;;  %v1474_v26 = vmul.f32 %v2280_v8, %v3674_v46  ;;  %v2282_v19 = vpop.eup %2281  ;;  %2287 = vpow2.f32 %v615_v58  ;;  %v521_v25 = vmul.f32 1.442695, %v3699_v10 }
 0x1b6   :  { %1913 = vst [vmem:[#allocation2 + $0x60] sm:$0xff] %v1849_v51  ;;  %v3703_v41 = vadd.f32 1.0, %v745_v63  ;;  %v634_v20 = vadd.f32 1.0, %v2282_v19  ;;  %vm1479_vm10 = vweird.f32 %v2280_v8  ;;  %vm3716_vm11 = vcmp.eq.f32.partialorder %v1482_v15, 8.507059e+37 }
 0x1b7   :  { %v1865_v50 = vmul.f32 %v1801_v29, %v3547_v49  ;;  %v1475_v5 = vsub.f32 1.0, %v1474_v26  ;;  %v2284_v40 = vpop.eup %2283  ;;  %v553_v13 = vmul.f32 1.442695, %v3706_v43  ;;  %v585_v56 = vmul.f32 1.442695, %v3709_v22  ;;  %vm1480_vm12 = vmor %vm1478_vm9, %vm1479_vm10  ;;  %v346_v1 = vpop.f32.mrf.mxu0 }
 0x1b8   :  { %2289 = vrcp.f32 %v3703_v41  ;;  %v2286_v24 = vpop.eup %2285  ;;  %v698_v12 = vmul.f32 %v634_v20, %v634_v20  ;;  %v650_v60 = vadd.f32 1.0, %v2284_v40  ;;  %v1722_v14 = vand.u32 2147483647, %v3703_v41 }
 0x1b9   :  { %1929 = vst [vmem:[#allocation2 + $0xe0] sm:$0xff] %v1865_v50  ;;  %v1476_v11 = vmul.f32 %v2280_v8, %v1475_v5  ;;  %v666_v49 = vadd.f32 1.0, %v2286_v24  ;;  %v1485_v44 = vor.u32 1.1754944e-38, %v1484_v61  ;;  %v1724_v36 = vand.u32 2147483648, %v3703_v41 }
 0x1ba   :  { %v3723_v38 = vadd.f32 1.0, %v698_v12  ;;  %v714_v55 = vmul.f32 %v650_v60, %v650_v60  ;;  %2291 = vpow2.f32 %v521_v25  ;;  %vm1718_vm13 = vweird.f32 %v3703_v41 }
 0x1bb   :  { %v1477_v16 = vadd.f32 %v2280_v8, %v1476_v11  ;;  %v2288_v31 = vpop.eup %2287  ;;  %v730_v30 = vmul.f32 %v666_v49, %v666_v49  ;;  %v3731_v47 = vadd.f32 %v3533_v33, %v487_v27  ;;  %vm3740_vm14 = vcmp.eq.f32.partialorder %v1722_v14, 8.507059e+37 }
 0x1bc   :  { %2293 = vrcp.f32 %v3723_v38  ;;  %v3735_v42 = vadd.f32 1.0, %v714_v55  ;;  %v682_v52 = vadd.f32 1.0, %v2288_v31  ;;  %v1725_v7 = vor.u32 1.1754944e-38, %v1724_v36 }
 0x1bd   :  { %v1481_v48 = vsel %vm1480_vm12, %v2280_v8, %v1477_v16  ;;  %v3737_v46 = vadd.f32 1.0, %v730_v30  ;;  %2295 = vpow2.f32 %v553_v13  ;;  %v1017_v2 = vand.u32 2147483647, %v3723_v38 }
 0x1be   :  { %v2290_v17 = vpop.eup %2289  ;;  %v1486_v34 = vsel %vm3716_vm11, %v1485_v44, %v1481_v48  ;;  %2297 = vpow2.f32 %v585_v56  ;;  %v1019_v53 = vand.u32 2147483648, %v3723_v38  ;;  %v617_v54 = vmul.f32 1.442695, %v3731_v47 }
 0x1bf   :  { %v1487_v57 = vmul.f32 2.0, %v1486_v34  ;;  %v1714_v39 = vmul.f32 %v2290_v17, %v3703_v41  ;;  %2299 = vrcp.f32 %v3735_v42  ;;  %vm1719_vm15 = vweird.f32 %v2290_v17 }
 0x1c0   :  { %2301 = vrcp.f32 %v3737_v46  ;;  %v2292_v6 = vpop.eup %2291  ;;  %vm1013_vm0 = vweird.f32 %v3723_v38  ;;  %v1259_v45 = vand.u32 2147483648, %v3735_v42  ;;  %v3752_v21 = vadd.f32 %v3533_v33, %v346_v1  ;;  %vm1720_vm3 = vmor %vm1718_vm13, %vm1719_vm15 }
 0x1c1   :  { %v1817_v59 = vsub.f32 1.0, %v1487_v57  ;;  %v1715_v62 = vsub.f32 1.0, %v1714_v39  ;;  %v1257_v8 = vand.u32 2147483647, %v3735_v42  ;;  %v746_v51 = vmul.f32 %v682_v52, %v682_v52 }
 0x1c2   :  { %v2294_v58 = vpop.eup %2293  ;;  %vm3757_vm1 = vcmp.eq.f32.partialorder %v1017_v2, 8.507059e+37  ;;  %v1020_v15 = vor.u32 1.1754944e-38, %v1019_v53  ;;  %vm1253_vm2 = vweird.f32 %v3735_v42  ;;  %v1497_v5 = vand.u32 2147483647, %v3737_v46 }
 0x1c3   :  { %v1881_v18 = vmul.f32 %v1817_v59, %v3563_v28  ;;  %v1716_v4 = vmul.f32 %v2290_v17, %v1715_v62  ;;  %v2296_v63 = vpop.eup %2295  ;;  %v1009_v29 = vmul.f32 %v2294_v58, %v3723_v38  ;;  %v1499_v28 = vand.u32 2147483648, %v3737_v46 }
 0x1c4   :  { %v2298_v19 = vpop.eup %2297  ;;  %v3764_v20 = vadd.f32 1.0, %v746_v51  ;;  %v1260_v25 = vor.u32 1.1754944e-38, %v1259_v45  ;;  %vm1493_vm4 = vweird.f32 %v3737_v46  ;;  %v635_v24 = vadd.f32 1.0, %v2292_v6 }
 0x1c5   :  { %1945 = vst [vmem:[#allocation2 + $0x160] sm:$0xff] %v1881_v18  ;;  %v1717_v50 = vadd.f32 %v2290_v17, %v1716_v4  ;;  %v2300_v40 = vpop.eup %2299  ;;  %v1010_v61 = vsub.f32 1.0, %v1009_v29  ;;  %vm3771_vm5 = vcmp.eq.f32.partialorder %v1257_v8, 8.507059e+37  ;;  %v651_v49 = vadd.f32 1.0, %v2296_v63 }
 0x1c6   :  { %v2302_v11 = vpop.eup %2301  ;;  %v1249_v60 = vmul.f32 %v2300_v40, %v3735_v42  ;;  %2303 = vrcp.f32 %v3764_v20  ;;  %vm1014_vm8 = vweird.f32 %v2294_v58  ;;  %vm3779_vm6 = vcmp.eq.f32.partialorder %v1497_v5, 8.507059e+37 }
 0x1c7   :  { %v1721_v12 = vsel %vm1720_vm3, %v2290_v17, %v1717_v50  ;;  %v1011_v13 = vmul.f32 %v2294_v58, %v1010_v61  ;;  %v1489_v56 = vmul.f32 %v2302_v11, %v3737_v46  ;;  %v1500_v55 = vor.u32 1.1754944e-38, %v1499_v28  ;;  %vm1015_vm7 = vmor %vm1013_vm0, %vm1014_vm8 }
 0x1c8   :  { %v1726_v41 = vsel %vm3740_vm14, %v1725_v7, %v1721_v12  ;;  %v1250_v16 = vsub.f32 1.0, %v1249_v60  ;;  %v699_v36 = vmul.f32 %v635_v24, %v635_v24  ;;  %2305 = vpow2.f32 %v617_v54  ;;  %v394_v24 = vpop.f32.mrf.mxu1 }
 0x1c9   :  { %v1727_v27 = vmul.f32 2.0, %v1726_v41  ;;  %v1012_v31 = vadd.f32 %v2294_v58, %v1011_v13  ;;  %v1490_v44 = vsub.f32 1.0, %v1489_v56  ;;  %vm1254_vm9 = vweird.f32 %v2300_v40 }
 0x1ca   :  { %v1251_v48 = vmul.f32 %v2300_v40, %v1250_v16  ;;  %v715_v17 = vmul.f32 %v651_v49, %v651_v49  ;;  %vm1494_vm10 = vweird.f32 %v2302_v11  ;;  %v3785_v39 = vadd.f32 1.0, %v699_v36  ;;  %vm1255_vm11 = vmor %vm1253_vm2, %vm1254_vm9 }
 0x1cb   :  { %v1833_v30 = vsub.f32 1.0, %v1727_v27  ;;  %v1016_v34 = vsel %vm1015_vm7, %v2294_v58, %v1012_v31  ;;  %v1491_v57 = vmul.f32 %v2302_v11, %v1490_v44  ;;  %v667_v2 = vadd.f32 1.0, %v2298_v19  ;;  %vm1495_vm12 = vmor %vm1493_vm4, %vm1494_vm10 }
 0x1cc   :  { %v2304_v32 = vpop.eup %2303  ;;  %v1021_v1 = vsel %vm3757_vm1, %v1020_v15, %v1016_v34  ;;  %v1252_v7 = vadd.f32 %v2300_v40, %v1251_v48  ;;  %v3793_v62 = vadd.f32 1.0, %v715_v17  ;;  %2307 = vrcp.f32 %v3785_v39 }
 0x1cd   :  { %v1897_v52 = vmul.f32 %v1833_v30, %v3586_v0  ;;  %v1022_v53 = vmul.f32 2.0, %v1021_v1  ;;  %v1492_v38 = vadd.f32 %v2302_v11, %v1491_v57  ;;  %v1729_v59 = vmul.f32 %v2304_v32, %v3764_v20 }
 0x1ce   :  { %v1256_v54 = vsel %vm1255_vm11, %v2300_v40, %v1252_v7  ;;  %v1737_v0 = vand.u32 2147483647, %v3764_v20  ;;  %v523_v6 = vmul.f32 1.442695, %v3752_v21  ;;  %v2306_v45 = vpop.eup %2305  ;;  %vm1734_vm13 = vweird.f32 %v2304_v32 }
 0x1cf   :  { %1961 = vst [vmem:[#allocation2 + $0x1e0] sm:$0xff] %v1897_v52  ;;  %v1786_v58 = vsub.f32 1.0, %v1022_v53  ;;  %v1261_v42 = vsel %vm3771_vm5, %v1260_v25, %v1256_v54  ;;  %v1496_v18 = vsel %vm1495_vm12, %v2302_v11, %v1492_v38  ;;  %v1730_v4 = vsub.f32 1.0, %v1729_v59  ;;  %v490_v38 = vpop.f32.mrf.mxu3 }
 0x1d0   :  { %v1262_v8 = vmul.f32 2.0, %v1261_v42  ;;  %v1501_v51 = vsel %vm3779_vm6, %v1500_v55, %v1496_v18  ;;  %v1739_v46 = vand.u32 2147483648, %v3764_v20  ;;  %2309 = vrcp.f32 %v3793_v62 }
 0x1d1   :  { %v1850_v63 = vmul.f32 %v1786_v58, %v3671_v23  ;;  %v1502_v29 = vmul.f32 2.0, %v1501_v51  ;;  %v1731_v26 = vmul.f32 %v2304_v32, %v1730_v4  ;;  %vm1733_vm14 = vweird.f32 %v3764_v20  ;;  %v442_v23 = vpop.f32.mrf.mxu2 }
 0x1d2   :  { %v1802_v15 = vsub.f32 1.0, %v1262_v8  ;;  %v731_v5 = vmul.f32 %v667_v2, %v667_v2  ;;  %v2308_v28 = vpop.eup %2307  ;;  %vm1735_vm15 = vmor %vm1733_vm14, %vm1734_vm13  ;;  %v1740_v61 = vor.u32 1.1754944e-38, %v1739_v46  ;;  %v683_v25 = vadd.f32 1.0, %v2306_v45 }
 0x1d3   :  { %1914 = vst [vmem:[#allocation2 + $0x68] sm:$0xff] %v1850_v63  ;;  %v1818_v19 = vsub.f32 1.0, %v1502_v29  ;;  %v1732_v50 = vadd.f32 %v2304_v32, %v1731_v26  ;;  %2311 = vpow2.f32 %v523_v6  ;;  %vm1738_vm0 = vcmp.eq.f32.partialorder %v1737_v0, 8.507059e+37 }
 0x1d4   :  { %v1866_v40 = vmul.f32 %v1802_v15, %v3677_v9  ;;  %v1024_v60 = vmul.f32 %v2308_v28, %v3785_v39  ;;  %v1034_v20 = vand.u32 2147483648, %v3785_v39  ;;  %v3812_v49 = vadd.f32 1.0, %v731_v5 }
 0x1d5   :  { %v1882_v11 = vmul.f32 %v1818_v19, %v3684_v35  ;;  %v1736_v12 = vsel %vm1735_vm15, %v2304_v32, %v1732_v50  ;;  %v747_v41 = vmul.f32 %v683_v25, %v683_v25  ;;  %v3815_v27 = vadd.f32 %v3533_v33, %v394_v24 }
 0x1d6   :  { %1930 = vst [vmem:[#allocation2 + $0xe8] sm:$0xff] %v1866_v40  ;;  %v1741_v3 = vsel %vm1738_vm0, %v1740_v61, %v1736_v12  ;;  %v2310_v9 = vpop.eup %2309  ;;  %v1025_v56 = vsub.f32 1.0, %v1024_v60  ;;  %v3818_v35 = vadd.f32 %v3533_v33, %v442_v23  ;;  %vm1028_vm1 = vweird.f32 %v3785_v39 }
 0x1d7   :  { %1946 = vst [vmem:[#allocation2 + $0x168] sm:$0xff] %v1882_v11  ;;  %v1742_v13 = vmul.f32 2.0, %v1741_v3  ;;  %v1032_v16 = vand.u32 2147483647, %v3785_v39  ;;  %v1264_v14 = vmul.f32 %v2310_v9, %v3793_v62  ;;  %2313 = vrcp.f32 %v3812_v49 }
 0x1d8   :  { %v1026_v31 = vmul.f32 %v2308_v28, %v1025_v56  ;;  %vm1029_vm2 = vweird.f32 %v2308_v28  ;;  %v1272_v44 = vand.u32 2147483647, %v3793_v62  ;;  %v3825_v48 = vadd.f32 1.0, %v747_v41 }
 0x1d9   :  { %v1834_v55 = vsub.f32 1.0, %v1742_v13  ;;  %v2312_v36 = vpop.eup %2311  ;;  %v1265_v30 = vsub.f32 1.0, %v1264_v14  ;;  %v555_v17 = vmul.f32 1.442695, %v3815_v27  ;;  %v587_v34 = vmul.f32 1.442695, %v3818_v35  ;;  %vm1030_vm3 = vmor %vm1028_vm1, %vm1029_vm2 }
 0x1da   :  { %v1027_v32 = vadd.f32 %v2308_v28, %v1026_v31  ;;  %v1035_v52 = vor.u32 1.1754944e-38, %v1034_v20  ;;  %v1274_v1 = vand.u32 2147483648, %v3793_v62  ;;  %vm1268_vm4 = vweird.f32 %v3793_v62 }
 0x1db   :  { %v1898_v57 = vmul.f32 %v1834_v55, %v3694_v37  ;;  %v1266_v7 = vmul.f32 %v2310_v9, %v1265_v30  ;;  %vm1269_vm5 = vweird.f32 %v2310_v9  ;;  %2315 = vrcp.f32 %v3825_v48 }
 0x1dc   :  { %v1031_v2 = vsel %vm1030_vm3, %v2308_v28, %v1027_v32  ;;  %vm1033_vm8 = vcmp.eq.f32.partialorder %v1032_v16, 8.507059e+37  ;;  %v636_v53 = vadd.f32 1.0, %v2312_v36  ;;  %2317 = vpow2.f32 %v555_v17  ;;  %vm1270_vm7 = vmor %vm1268_vm4, %vm1269_vm5 }
 0x1dd   :  { %1962 = vst [vmem:[#allocation2 + $0x1e8] sm:$0xff] %v1898_v57  ;;  %v2314_v37 = vpop.eup %2313  ;;  %v1036_v59 = vsel %vm1033_vm8, %v1035_v52, %v1031_v2  ;;  %v1267_v54 = vadd.f32 %v2310_v9, %v1266_v7  ;;  %vm1273_vm6 = vcmp.eq.f32.partialorder %v1272_v44, 8.507059e+37  ;;  %2319 = vpow2.f32 %v587_v34 }
 0x1de   :  { %v1037_v0 = vmul.f32 2.0, %v1036_v59  ;;  %v1275_v39 = vor.u32 1.1754944e-38, %v1274_v1  ;;  %v1504_v6 = vmul.f32 %v2314_v37, %v3812_v49  ;;  %v1512_v45 = vand.u32 2147483647, %v3812_v49 }
 0x1df   :  { %v1271_v58 = vsel %vm1270_vm7, %v2310_v9, %v1267_v54  ;;  %v1514_v42 = vand.u32 2147483648, %v3812_v49  ;;  %v700_v18 = vmul.f32 %v636_v53, %v636_v53  ;;  %v3841_v4 = vadd.f32 %v3533_v33, %v490_v38 }
 0x1e0   :  { %v1787_v8 = vsub.f32 1.0, %v1037_v0  ;;  %v1276_v51 = vsel %vm1273_vm6, %v1275_v39, %v1271_v58  ;;  %v1505_v46 = vsub.f32 1.0, %v1504_v6  ;;  %vm1508_vm9 = vweird.f32 %v3812_v49 }
 0x1e1   :  { %v2316_v63 = vpop.eup %2315  ;;  %v1277_v29 = vmul.f32 2.0, %v1276_v51  ;;  %vm1509_vm10 = vweird.f32 %v2314_v37  ;;  %v3844_v62 = vadd.f32 1.0, %v700_v18  ;;  %v619_v5 = vmul.f32 1.442695, %v3841_v4 }
 0x1e2   :  { %v2318_v26 = vpop.eup %2317  ;;  %v1851_v15 = vmul.f32 %v1787_v8, %v3699_v10  ;;  %v1506_v19 = vmul.f32 %v2314_v37, %v1505_v46  ;;  %v1744_v50 = vmul.f32 %v2316_v63, %v3825_v48  ;;  %vm3849_vm11 = vcmp.eq.f32.partialorder %v1512_v45, 8.507059e+37  ;;  %vm1510_vm12 = vmor %vm1508_vm9, %vm1509_vm10 }
 0x1e3   :  { %v2320_v33 = vpop.eup %2319  ;;  %v1803_v28 = vsub.f32 1.0, %v1277_v29  ;;  %v1515_v61 = vor.u32 1.1754944e-38, %v1514_v42  ;;  %2321 = vrcp.f32 %v3844_v62  ;;  %v1752_v23 = vand.u32 2147483647, %v3825_v48 }
 0x1e4   :  { %1915 = vst [vmem:[#allocation2 + $0x70] sm:$0xff] %v1851_v15  ;;  %v1507_v25 = vadd.f32 %v2314_v37, %v1506_v19  ;;  %v1745_v24 = vsub.f32 1.0, %v1744_v50  ;;  %v652_v10 = vadd.f32 1.0, %v2318_v26  ;;  %vm1749_vm13 = vweird.f32 %v2316_v63 }
 0x1e5   :  { %v1867_v11 = vmul.f32 %v1803_v28, %v3706_v43  ;;  %v1754_v12 = vand.u32 2147483648, %v3825_v48  ;;  %v668_v60 = vadd.f32 1.0, %v2320_v33  ;;  %2323 = vpow2.f32 %v619_v5 }
 0x1e6   :  { %v1511_v3 = vsel %vm1510_vm12, %v2314_v37, %v1507_v25  ;;  %v1746_v20 = vmul.f32 %v2316_v63, %v1745_v24  ;;  %v716_v41 = vmul.f32 %v652_v10, %v652_v10  ;;  %vm1748_vm14 = vweird.f32 %v3825_v48 }
 0x1e7   :  { %1931 = vst [vmem:[#allocation2 + $0xf0] sm:$0xff] %v1867_v11  ;;  %v1516_v9 = vsel %vm3849_vm11, %v1515_v61, %v1511_v3  ;;  %v732_v13 = vmul.f32 %v668_v60, %v668_v60  ;;  %vm1750_vm15 = vmor %vm1748_vm14, %vm1749_vm13  ;;  %v1755_v14 = vor.u32 1.1754944e-38, %v1754_v12  ;;  %vm1753_vm0 = vcmp.eq.f32.partialorder %v1752_v23, 8.507059e+37 }
 0x1e8   :  { %v1517_v56 = vmul.f32 2.0, %v1516_v9  ;;  %v1747_v16 = vadd.f32 %v2316_v63, %v1746_v20  ;;  %v780_v43 = vadd.f32 1.0, %v716_v41  ;;  %vm1043_vm1 = vweird.f32 %v3844_v62 }
 0x1e9   :  { %v2322_v49 = vpop.eup %2321  ;;  %v3864_v55 = vadd.f32 1.0, %v732_v13  ;;  %v1049_v48 = vand.u32 2147483648, %v3844_v62  ;;  %v1047_v7 = vand.u32 2147483647, %v3844_v62 }
 0x1ea   :  { %v1819_v31 = vsub.f32 1.0, %v1517_v56  ;;  %v1751_v44 = vsel %vm1750_vm15, %v2316_v63, %v1747_v16  ;;  %v1039_v36 = vmul.f32 %v2322_v49, %v3844_v62  ;;  %2325 = vrcp.f32 %v780_v43 }
 0x1eb   :  { %v1756_v30 = vsel %vm1753_vm0, %v1755_v14, %v1751_v44  ;;  %v2324_v17 = vpop.eup %2323  ;;  %2327 = vrcp.f32 %v3864_v55  ;;  %vm1044_vm2 = vweird.f32 %v2322_v49  ;;  %vm1048_vm4 = vcmp.eq.f32.partialorder %v1047_v7, 8.507059e+37 }
 0x1ec   :  { %v1883_v34 = vmul.f32 %v1819_v31, %v3709_v22  ;;  %v1757_v57 = vmul.f32 2.0, %v1756_v30  ;;  %v1040_v32 = vsub.f32 1.0, %v1039_v36  ;;  %v684_v2 = vadd.f32 1.0, %v2324_v17  ;;  %vm1045_vm3 = vmor %vm1043_vm1, %vm1044_vm2 }
 0x1ed   :  { %v1050_v22 = vor.u32 1.1754944e-38, %v1049_v48  ;;  %vm1283_vm5 = vweird.f32 %v780_v43  ;;  %v1287_v8 = vand.u32 2147483647, %v780_v43  ;;  %v1289_v51 = vand.u32 2147483648, %v780_v43 }
 0x1ee   :  { %1947 = vst [vmem:[#allocation2 + $0x170] sm:$0xff] %v1883_v34  ;;  %v1835_v52 = vsub.f32 1.0, %v1757_v57  ;;  %v1041_v1 = vmul.f32 %v2322_v49, %v1040_v32  ;;  %v748_v59 = vmul.f32 %v684_v2, %v684_v2  ;;  %v1527_v29 = vand.u32 2147483647, %v3864_v55 }
 0x1ef   :  { %v1529_v62 = vand.u32 2147483648, %v3864_v55  ;;  %v1290_v50 = vor.u32 1.1754944e-38, %v1289_v51  ;;  %vm1288_vm9 = vcmp.eq.f32.partialorder %v1287_v8, 8.507059e+37  ;;  %vm1523_vm10 = vweird.f32 %v3864_v55 }
 0x1f0   :  { %v1899_v53 = vmul.f32 %v1835_v52, %v3731_v47  ;;  %v1042_v38 = vadd.f32 %v2322_v49, %v1041_v1  ;;  %v2326_v37 = vpop.eup %2325  ;;  %v812_v45 = vadd.f32 1.0, %v748_v59  ;;  %vm1528_vm12 = vcmp.eq.f32.partialorder %v1527_v29, 8.507059e+37 }
 0x1f1   :  { %v1279_v0 = vmul.f32 %v2326_v37, %v780_v43  ;;  %v2328_v39 = vpop.eup %2327  ;;  %vm1284_vm8 = vweird.f32 %v2326_v37  ;;  %v1530_v61 = vor.u32 1.1754944e-38, %v1529_v62 }
 0x1f2   :  { %1963 = vst [vmem:[#allocation2 + $0x1f0] sm:$0xff] %v1899_v53  ;;  %v1046_v54 = vsel %vm1045_vm3, %v2322_v49, %v1042_v38  ;;  %v1519_v18 = vmul.f32 %v2328_v39, %v3864_v55  ;;  %2329 = vrcp.f32 %v812_v45  ;;  %vm1524_vm6 = vweird.f32 %v2328_v39  ;;  %vm1285_vm7 = vmor %vm1283_vm5, %vm1284_vm8 }
 0x1f3   :  { %v1051_v6 = vsel %vm1048_vm4, %v1050_v22, %v1046_v54  ;;  %v1280_v42 = vsub.f32 1.0, %v1279_v0  ;;  %vm1525_vm11 = vmor %vm1523_vm10, %vm1524_vm6  ;;  %v1767_v60 = vand.u32 2147483647, %v812_v45  ;;  %v1769_v3 = vand.u32 2147483648, %v812_v45 }
 0x1f4   :  { %v1052_v58 = vmul.f32 2.0, %v1051_v6  ;;  %v1520_v63 = vsub.f32 1.0, %v1519_v18  ;;  %vm1763_vm14 = vweird.f32 %v812_v45 }
 0x1f5   :  { %v1281_v46 = vmul.f32 %v2326_v37, %v1280_v42  ;;  %v1770_v16 = vor.u32 1.1754944e-38, %v1769_v3  ;;  %vm1768_vm0 = vcmp.eq.f32.partialorder %v1767_v60, 8.507059e+37 }
 0x1f6   :  { %v1788_v47 = vsub.f32 1.0, %v1052_v58  ;;  %v1521_v19 = vmul.f32 %v2328_v39, %v1520_v63 }
 0x1f7   :  { %v1282_v15 = vadd.f32 %v2326_v37, %v1281_v46 }
 0x1f8   :  { %v1852_v26 = vmul.f32 %v1788_v47, %v3752_v21  ;;  %v1522_v33 = vadd.f32 %v2328_v39, %v1521_v19  ;;  %v2330_v28 = vpop.eup %2329 }
 0x1f9   :  { %v1286_v5 = vsel %vm1285_vm7, %v2326_v37, %v1282_v15  ;;  %v1759_v23 = vmul.f32 %v2330_v28, %v812_v45  ;;  %vm1764_vm13 = vweird.f32 %v2330_v28 }
 0x1fa   :  { %1916 = vst [vmem:[#allocation2 + $0x78] sm:$0xff] %v1852_v26  ;;  %v1291_v40 = vsel %vm1288_vm9, %v1290_v50, %v1286_v5  ;;  %v1526_v24 = vsel %vm1525_vm11, %v2328_v39, %v1522_v33  ;;  %vm1765_vm15 = vmor %vm1763_vm14, %vm1764_vm13 }
 0x1fb   :  { %v1292_v25 = vmul.f32 2.0, %v1291_v40  ;;  %v1531_v21 = vsel %vm1528_vm12, %v1530_v61, %v1526_v24  ;;  %v1760_v12 = vsub.f32 1.0, %v1759_v23 }
 0x1fc   :  { %v1532_v11 = vmul.f32 2.0, %v1531_v21 }
 0x1fd   :  { %v1804_v10 = vsub.f32 1.0, %v1292_v25  ;;  %v1761_v9 = vmul.f32 %v2330_v28, %v1760_v12 }
 0x1fe   :  { %v1820_v41 = vsub.f32 1.0, %v1532_v11 }
 0x1ff   :  { %v1868_v20 = vmul.f32 %v1804_v10, %v3815_v27  ;;  %v1762_v56 = vadd.f32 %v2330_v28, %v1761_v9 }
 0x200   :  { %v1884_v13 = vmul.f32 %v1820_v41, %v3818_v35 }
 0x201   :  { %1932 = vst [vmem:[#allocation2 + $0xf8] sm:$0xff] %v1868_v20  ;;  %v1766_v43 = vsel %vm1765_vm15, %v2330_v28, %v1762_v56 }
 0x202   :  { %1948 = vst [vmem:[#allocation2 + $0x178] sm:$0xff] %v1884_v13  ;;  %v1771_v49 = vsel %vm1768_vm0, %v1770_v16, %v1766_v43 }
 0x203   :  { %v1772_v14 = vmul.f32 2.0, %v1771_v49 }
 0x205   :  { %v1836_v27 = vsub.f32 1.0, %v1772_v14 }
 0x207   :  { %v1900_v35 = vmul.f32 %v1836_v27, %v3841_v4 }
 0x209   :  { %1964 = vst [vmem:[#allocation2 + $0x1f8] sm:$0xff] %v1900_v35 }
 0x20a   :  { %1977 = dma.vmem_to_hbm [thread:$0]  %s1970_s21, 8192, %s1972_s24, [#allocation3], %s2360_s25, %s2360_s25, %s2361_s26  }
 0x20b   :  { %2357 = dma.done.wait [#allocation3], 8192  }
 0x20c   :  { %2358 = vsyncadd [#allocation3], 4294959104 }
 0x20d   :  { %1982 = vsyncpa [#allocation3], 1 }

</bundles_post_ra>
